<compile_context>
chip_gen: v7x
topology: tpu7x:2x2x1
jax: 0.10.0
libtpu: 0.0.40
codegen_flags: <defaults>
</compile_context>

<pallas_src>
import functools

import jax
import jax.numpy as jnp
from jax.experimental import pallas as pl
from jax.experimental.pallas import tpu as pltpu


def _edge_decoder_kernel(zs_ref, zd_ref, w1s_ref, w1d_ref, b1_ref, w2_ref,
                         b2_ref, o_ref):
    # zs_ref, zd_ref: [TE, H]    w1s_ref, w1d_ref: [H, H]
    # b1_ref: [1, H]             w2_ref: [8, H] (identical rows)
    # b2_ref: [1, 1]             o_ref : [1, TE]  (edges on the lane dim)
    h = jnp.dot(zs_ref[...], w1s_ref[...], preferred_element_type=jnp.float32)
    h = h + jnp.dot(zd_ref[...], w1d_ref[...],
                    preferred_element_type=jnp.float32)
    h = jnp.maximum(h + b1_ref[...], 0.0)                    # ReLU, [TE, H]

    # lin2 (output width 1): contract over H with the edge axis on lanes,
    # i.e. (8, H) x (TE, H)^T -> (8, TE)  (flash-attention q@k^T pattern).
    # All 8 rows of w2_ref are identical; keep row 0 for a lane-dense store.
    out = jax.lax.dot_general(
        w2_ref[...], h, (((1,), (1,)), ((), ())),
        preferred_element_type=jnp.float32)                  # [8, TE]
    o_ref[...] = (out[0:1, :] + b2_ref[...]).astype(o_ref.dtype)   # [1, TE]


@functools.partial(jax.jit, static_argnames=("tile_e",))
def edge_decoder_pallas(z_src, z_dst, edge_label_index, w1, b1, w2, b2,
                        tile_e=1024):
    """Pallas implementation of EdgeDecoder.forward.

    z_src: [N_src, H], z_dst: [N_dst, H], edge_label_index: [2, E] int32.
    w1: [2H, H] (pre-transposed nn.Linear weight), b1: [H],
    w2: [H, 1] (pre-transposed), b2: [1].
    Returns: [E, 1] float32.
    """
    if tile_e % 128 != 0:
        raise ValueError("tile_e must be a multiple of 128")

    H = z_src.shape[-1]
    row = edge_label_index[0]
    col = edge_label_index[1]
    E = row.shape[0]

    # Pad the cheap int32 index vectors (NOT the gathered activations) so the
    # gather comes out tile-aligned. Padded rows index node 0 (valid) and are
    # sliced off at the end.
    num_tiles = (E + tile_e - 1) // tile_e
    E_pad = num_tiles * tile_e
    if E_pad != E:
        row = jnp.pad(row, (0, E_pad - E))
        col = jnp.pad(col, (0, E_pad - E))

    # Gather (glue, plain JAX / XLA gather). No concat: W1 is split instead.
    zs = z_src[row]                                  # [E_pad, H]
    zd = z_dst[col]                                  # [E_pad, H]

    w1s = w1[:H]                                     # [H, H]
    w1d = w1[H:]                                     # [H, H]
    b1_2d = b1.reshape(1, H)
    # Replicate the w2 row to 8 sublanes so the lin2 matmul has a clean M=8.
    w2_8 = jnp.broadcast_to(w2.reshape(1, H), (8, H))
    b2_2d = b2.reshape(1, 1)

    out = pl.pallas_call(
        _edge_decoder_kernel,
        out_shape=jax.ShapeDtypeStruct((1, E_pad), jnp.float32),
        grid_spec=pltpu.PrefetchScalarGridSpec(
            num_scalar_prefetch=0,
            grid=(num_tiles,),
            in_specs=[
                pl.BlockSpec((tile_e, H), lambda i: (i, 0)),   # z_src[row] tile
                pl.BlockSpec((tile_e, H), lambda i: (i, 0)),   # z_dst[col] tile
                pl.BlockSpec((H, H), lambda i: (0, 0)),        # W1 (src half)
                pl.BlockSpec((H, H), lambda i: (0, 0)),        # W1 (dst half)
                pl.BlockSpec((1, H), lambda i: (0, 0)),        # b1
                pl.BlockSpec((8, H), lambda i: (0, 0)),        # w2 (replicated)
                pl.BlockSpec((1, 1), lambda i: (0, 0)),        # b2
            ],
            out_specs=pl.BlockSpec((1, tile_e), lambda i: (0, i)),
        ),
        compiler_params=pltpu.CompilerParams(
            dimension_semantics=("parallel",)),
    )(zs, zd, w1s, w1d, b1_2d, w2_8, b2_2d)

    # TODO(synk): optional bf16 streaming of zs/zd would halve HBM traffic but
    # changes numerics vs. the f32 PyTorch forward, so it is not enabled here.
    return out[0, :E].reshape(E, 1)


def reference_forward(z_src, z_dst, edge_label_index, w1, b1, w2, b2):
    row = edge_label_index[0]
    col = edge_label_index[1]
    z = jnp.concatenate([z_src[row], z_dst[col]], axis=-1)
    z = jnp.maximum(z @ w1 + b1, 0.0)
    return z @ w2 + b2


if __name__ == "__main__":
    key = jax.random.PRNGKey(0)
    H = 32          # hidden_channels
    N_src, N_dst = 6, 5
    E = 8           # number of edges

    keys = jax.random.split(key, 10)
    (k1, k2, k3, k4, k5, k6, k7, k8, k9, k10) = keys

    z_src = jax.random.normal(k1, (N_src, H), dtype=jnp.float32)
    z_dst = jax.random.normal(k2, (N_dst, H), dtype=jnp.float32)
    row = jax.random.randint(k3, (E,), 0, N_src, dtype=jnp.int32)
    col = jax.random.randint(k4, (E,), 0, N_dst, dtype=jnp.int32)
    edge_label_index = jnp.stack([row, col], axis=0)          # [2, E]

    # Deterministic parameter init (shapes from nn.Linear):
    #   lin1: Linear(2H, H) -> weight [H, 2H], bias [H]
    #   lin2: Linear(H, 1)  -> weight [1, H],  bias [1]
    # Stored pre-transposed for the kernel: w1 [2H, H], w2 [H, 1].
    bound1 = 1.0 / jnp.sqrt(2.0 * H)
    bound2 = 1.0 / jnp.sqrt(1.0 * H)
    w1 = jax.random.uniform(k5, (2 * H, H), minval=-bound1, maxval=bound1,
                            dtype=jnp.float32)
    b1 = jax.random.uniform(k6, (H,), minval=-bound1, maxval=bound1,
                            dtype=jnp.float32)
    w2 = jax.random.uniform(k7, (H, 1), minval=-bound2, maxval=bound2,
                            dtype=jnp.float32)
    b2 = jax.random.uniform(k8, (1,), minval=-bound2, maxval=bound2,
                            dtype=jnp.float32)

    # Check 1: tiny edge set (single grid tile, heavy padding of indices).
    out = edge_decoder_pallas(z_src, z_dst, edge_label_index, w1, b1, w2, b2)
    out = jax.block_until_ready(out)
    ref = reference_forward(z_src, z_dst, edge_label_index, w1, b1, w2, b2)
    assert out.shape == (E, 1), out.shape
    assert jnp.allclose(out, ref, atol=1e-5, rtol=1e-5), (out, ref)

    # Check 2: multi-tile grid with a ragged last tile (E2 not a tile multiple).
    E2 = 300
    row2 = jax.random.randint(k9, (E2,), 0, N_src, dtype=jnp.int32)
    col2 = jax.random.randint(k10, (E2,), 0, N_dst, dtype=jnp.int32)
    eli2 = jnp.stack([row2, col2], axis=0)
    out2 = edge_decoder_pallas(z_src, z_dst, eli2, w1, b1, w2, b2, tile_e=128)
    out2 = jax.block_until_ready(out2)
    ref2 = reference_forward(z_src, z_dst, eli2, w1, b1, w2, b2)
    assert out2.shape == (E2, 1), out2.shape
    assert jnp.allclose(out2, ref2, atol=1e-5, rtol=1e-5)

    print("KERNEL_OK")
</pallas_src>

<mosaic_0001>
module attributes {stable_mosaic.version = 11 : i64} {
  func.func @_edge_decoder_kernel(%arg0: i32, %arg1: memref<1024x32xf32, #tpu.memory_space<vmem>>, %arg2: memref<1024x32xf32, #tpu.memory_space<vmem>>, %arg3: memref<32x32xf32, #tpu.memory_space<vmem>>, %arg4: memref<32x32xf32, #tpu.memory_space<vmem>>, %arg5: memref<1x32xf32, #tpu.memory_space<vmem>>, %arg6: memref<8x32xf32, #tpu.memory_space<vmem>>, %arg7: memref<1x1xf32, #tpu.memory_space<vmem>>, %arg8: memref<1x1024xf32, #tpu.memory_space<vmem>>) attributes {dimension_semantics = [#tpu.dimension_semantics<parallel>], iteration_bounds = array<i64: 1>, scalar_prefetch = 0 : i64, scratch_operands = 0 : i64, tpu.core_type = #tpu.core_type<tc>, window_params = [{transform_indices = @transform_0, window_bounds = array<i64: 1024, 32>}, {transform_indices = @transform_1, window_bounds = array<i64: 1024, 32>}, {pipeline_mode = #tpu.pipeline_mode<synchronous>, transform_indices = @transform_2, window_bounds = array<i64: 32, 32>}, {pipeline_mode = #tpu.pipeline_mode<synchronous>, transform_indices = @transform_3, window_bounds = array<i64: 32, 32>}, {pipeline_mode = #tpu.pipeline_mode<synchronous>, transform_indices = @transform_4, window_bounds = array<i64: 1, 32>}, {pipeline_mode = #tpu.pipeline_mode<synchronous>, transform_indices = @transform_5, window_bounds = array<i64: 8, 32>}, {pipeline_mode = #tpu.pipeline_mode<synchronous>, transform_indices = @transform_6, window_bounds = array<i64: 1, 1>}, {transform_indices = @transform_7, window_bounds = array<i64: 1, 1024>}]} {
    %c0 = arith.constant 0 : index
    %c0_0 = arith.constant 0 : index
    %0 = vector.load %arg1[%c0, %c0_0] : memref<1024x32xf32, #tpu.memory_space<vmem>>, vector<1024x32xf32>
    %c0_1 = arith.constant 0 : index
    %c0_2 = arith.constant 0 : index
    %1 = vector.load %arg3[%c0_1, %c0_2] : memref<32x32xf32, #tpu.memory_space<vmem>>, vector<32x32xf32>
    %cst = arith.constant dense<0.000000e+00> : vector<1024x32xf32>
    %2 = tpu.matmul %0, %1, %cst {dimension_numbers = #tpu.dot_dimension_numbers<[1], [0], [0], [1], [0, 0, 1, 1], [], []>} : vector<1024x32xf32>, vector<32x32xf32>, vector<1024x32xf32> -> vector<1024x32xf32>
    %c0_3 = arith.constant 0 : index
    %c0_4 = arith.constant 0 : index
    %3 = vector.load %arg2[%c0_3, %c0_4] : memref<1024x32xf32, #tpu.memory_space<vmem>>, vector<1024x32xf32>
    %c0_5 = arith.constant 0 : index
    %c0_6 = arith.constant 0 : index
    %4 = vector.load %arg4[%c0_5, %c0_6] : memref<32x32xf32, #tpu.memory_space<vmem>>, vector<32x32xf32>
    %cst_7 = arith.constant dense<0.000000e+00> : vector<1024x32xf32>
    %5 = tpu.matmul %3, %4, %cst_7 {dimension_numbers = #tpu.dot_dimension_numbers<[1], [0], [0], [1], [0, 0, 1, 1], [], []>} : vector<1024x32xf32>, vector<32x32xf32>, vector<1024x32xf32> -> vector<1024x32xf32>
    %6 = arith.addf %2, %5 : vector<1024x32xf32>
    %c0_8 = arith.constant 0 : index
    %c0_9 = arith.constant 0 : index
    %7 = vector.load %arg5[%c0_8, %c0_9] : memref<1x32xf32, #tpu.memory_space<vmem>>, vector<1x32xf32>
    %8 = vector.broadcast %7 : vector<1x32xf32> to vector<1024x32xf32>
    %9 = arith.addf %6, %8 : vector<1024x32xf32>
    %cst_10 = arith.constant 0.000000e+00 : f32
    %10 = vector.broadcast %cst_10 : f32 to vector<1024x32xf32>
    %11 = arith.maximumf %9, %10 : vector<1024x32xf32>
    %c0_11 = arith.constant 0 : index
    %c0_12 = arith.constant 0 : index
    %12 = vector.load %arg6[%c0_11, %c0_12] : memref<8x32xf32, #tpu.memory_space<vmem>>, vector<8x32xf32>
    %cst_13 = arith.constant dense<0.000000e+00> : vector<8x1024xf32>
    %13 = tpu.matmul %12, %11, %cst_13 {dimension_numbers = #tpu.dot_dimension_numbers<[1], [1], [0], [0], [0, 0, 1, 0], [], []>} : vector<8x32xf32>, vector<1024x32xf32>, vector<8x1024xf32> -> vector<8x1024xf32>
    %14 = vector.extract_strided_slice %13 {offsets = [0, 0], sizes = [1, 1024], strides = [1, 1]} : vector<8x1024xf32> to vector<1x1024xf32>
    %c0_14 = arith.constant 0 : index
    %c0_15 = arith.constant 0 : index
    %15 = vector.load %arg7[%c0_14, %c0_15] : memref<1x1xf32, #tpu.memory_space<vmem>>, vector<1x1xf32>
    %16 = vector.broadcast %15 : vector<1x1xf32> to vector<1x1024xf32>
    %17 = arith.addf %14, %16 : vector<1x1024xf32>
    %c0_16 = arith.constant 0 : index
    %c0_17 = arith.constant 0 : index
    %18 = vector.load %arg8[%c0_16, %c0_17] : memref<1x1024xf32, #tpu.memory_space<vmem>>, vector<1x1024xf32>
    tpu.vector_store %arg8[%c0_16, %c0_17], %17 {strides = array<i32>} : memref<1x1024xf32, #tpu.memory_space<vmem>>, vector<1x1024xf32>,
    return
  }
  func.func @transform_0(%arg0: i32) -> (i32, i32) {
    %c0_i32 = arith.constant 0 : i32
    %c0_i32_0 = arith.constant 0 : i32
    return %arg0, %c0_i32 : i32, i32
  }
  func.func @transform_1(%arg0: i32) -> (i32, i32) {
    %c0_i32 = arith.constant 0 : i32
    %c0_i32_0 = arith.constant 0 : i32
    return %arg0, %c0_i32 : i32, i32
  }
  func.func @transform_2(%arg0: i32) -> (i32, i32) {
    %c0_i32 = arith.constant 0 : i32
    %c0_i32_0 = arith.constant 0 : i32
    %c0_i32_1 = arith.constant 0 : i32
    return %c0_i32, %c0_i32_0 : i32, i32
  }
  func.func @transform_3(%arg0: i32) -> (i32, i32) {
    %c0_i32 = arith.constant 0 : i32
    %c0_i32_0 = arith.constant 0 : i32
    %c0_i32_1 = arith.constant 0 : i32
    return %c0_i32, %c0_i32_0 : i32, i32
  }
  func.func @transform_4(%arg0: i32) -> (i32, i32) {
    %c0_i32 = arith.constant 0 : i32
    %c0_i32_0 = arith.constant 0 : i32
    %c0_i32_1 = arith.constant 0 : i32
    return %c0_i32, %c0_i32_0 : i32, i32
  }
  func.func @transform_5(%arg0: i32) -> (i32, i32) {
    %c0_i32 = arith.constant 0 : i32
    %c0_i32_0 = arith.constant 0 : i32
    %c0_i32_1 = arith.constant 0 : i32
    return %c0_i32, %c0_i32_0 : i32, i32
  }
  func.func @transform_6(%arg0: i32) -> (i32, i32) {
    %c0_i32 = arith.constant 0 : i32
    %c0_i32_0 = arith.constant 0 : i32
    %c0_i32_1 = arith.constant 0 : i32
    return %c0_i32, %c0_i32_0 : i32, i32
  }
  func.func @transform_7(%arg0: i32) -> (i32, i32) {
    %c0_i32 = arith.constant 0 : i32
    %c0_i32_0 = arith.constant 0 : i32
    return %c0_i32, %arg0 : i32, i32
  }
}

</mosaic_0001>

<bundles_post_ra>
// kernel: edge_decoder_pallas.1
= control target key start
LH: loop header
LB: loop body
LE: loop exit
PB: predicated region body
PF: predicated region fallthrough
CT: control target
= control target key end

     0   :  { %vm292_vm0 = vcmask 261120   ;;  %s6748_s3 = inlined_call_operand.vmem [shape: f32[32,32], index: 3, kind: input, shape index: {}]   ;;  %s6749_s1 = inlined_call_operand.vmem [shape: f32[1024,32], index: 1, kind: input, shape index: {}]   ;;  %s6750_s2 = inlined_call_operand.vmem [shape: f32[32,32], index: 2, kind: input, shape index: {}]   ;;  %s6751_s0 = inlined_call_operand.vmem [shape: f32[1024,32], index: 0, kind: input, shape index: {}]   ;;  %s6752_s5 = inlined_call_operand.vmem [shape: f32[8,32], index: 5, kind: input, shape index: {}]   ;;  %s6753_s4 = inlined_call_operand.vmem [shape: f32[1,32], index: 4, kind: input, shape index: {}]   ;;  %s6754_s6 = inlined_call_operand.<no memory space> [shape: f32[1,1], index: 6, kind: input, shape index: {}]   ;;  %s6755_s7 = inlined_call_operand.vmem [shape: f32[1,1024], index: 7, kind: output, shape index: {}]  }
   0x1   :  { %v288_v0 = vld [vmem:[%s6748_s3] sm:$0xff]  ;;  %v289_v1 = vld [vmem:[%s6748_s3 + $0x8] sm:$0xff]  ;;  %v290_v2 = vld [vmem:[%s6748_s3 + $0x10] sm:$0xff] }
   0x2   :  { %v4676_v3 = vpack.c.bf16 %v289_v1, %v288_v0  ;;  %v291_v4 = vld [vmem:[%s6748_s3 + $0x18] sm:$0xff]  ;;  %v160_v5 = vld [vmem:[%s6749_s1] sm:$0xff]  ;;  %v161_v7 = vld [vmem:[%s6749_s1 + $0x8] sm:$0xff] }
   0x3   :  { %v4680_v6 = vpack.c.bf16 %v291_v4, %v290_v2  ;;  %4284 = vmatprep.mubr.msk.f32.mxu0 %vm292_vm0, %v160_v5  ;;  %v162_v8 = vld [vmem:[%s6749_s1 + $0x10] sm:$0xff]  ;;  %v163_v9 = vld [vmem:[%s6749_s1 + $0x18] sm:$0xff]  ;;  %v164_v10 = vld [vmem:[%s6749_s1 + $0x20] sm:$0xff] }
   0x4   :  { %4677 = vmatprep.subr.bf16.mxu0 %v4676_v3  ;;  %4884 = vmatprep.subr.bf16.mxu1 %v4676_v3  ;;  %v165_v11 = vld [vmem:[%s6749_s1 + $0x28] sm:$0xff]  ;;  %v156_v12 = vld [vmem:[%s6750_s2] sm:$0xff]  ;;  %v166_v13 = vld [vmem:[%s6749_s1 + $0x30] sm:$0xff] }
   0x5   :  { %4679 = vmatpush3.bf16.msra.mxu0 %v4676_v3  ;;  %4886 = vmatpush3.bf16.msra.mxu1 %v4676_v3  ;;  %v157_v14 = vld [vmem:[%s6750_s2 + $0x8] sm:$0xff]  ;;  %v158_v16 = vld [vmem:[%s6750_s2 + $0x10] sm:$0xff]  ;;  %v159_v17 = vld [vmem:[%s6750_s2 + $0x18] sm:$0xff] }
   0x6   :  { %4681 = vmatprep.subr.bf16.mxu0 %v4680_v6  ;;  %4885 = vmatprep.subr.bf16.mxu1 %v4680_v6  ;;  %v4684_v15 = vpack.c.bf16 %v157_v14, %v156_v12  ;;  %v167_v18 = vld [vmem:[%s6749_s1 + $0x38] sm:$0xff]  ;;  %v4688_v19 = vpack.c.bf16 %v159_v17, %v158_v16  ;;  %v168_v20 = vld [vmem:[%s6749_s1 + $0x40] sm:$0xff]  ;;  %v169_v21 = vld [vmem:[%s6749_s1 + $0x48] sm:$0xff] }
   0x7   :  { %v170_v22 = vld [vmem:[%s6749_s1 + $0x50] sm:$0xff]  ;;  %v171_v23 = vld [vmem:[%s6749_s1 + $0x58] sm:$0xff]  ;;  %v172_v24 = vld [vmem:[%s6749_s1 + $0x60] sm:$0xff] }
   0x8   :  { %v173_v25 = vld [vmem:[%s6749_s1 + $0x68] sm:$0xff]  ;;  %v174_v26 = vld [vmem:[%s6749_s1 + $0x70] sm:$0xff]  ;;  %v175_v27 = vld [vmem:[%s6749_s1 + $0x78] sm:$0xff] }
   0x9   :  { %4683 = vmatpush3.bf16.msra.mxu0 %v4680_v6  ;;  %4887 = vmatpush3.bf16.msra.mxu1 %v4680_v6  ;;  %v176_v28 = vld [vmem:[%s6749_s1 + $0x80] sm:$0xff]  ;;  %v177_v29 = vld [vmem:[%s6749_s1 + $0x88] sm:$0xff]  ;;  %v178_v30 = vld [vmem:[%s6749_s1 + $0x90] sm:$0xff] }
   0xa   :  { %4685 = vmatprep.subr.bf16.mxu0 %v4684_v15  ;;  %v179_v31 = vld [vmem:[%s6749_s1 + $0x98] sm:$0xff]  ;;  %v180_v32 = vld [vmem:[%s6749_s1 + $0xa0] sm:$0xff]  ;;  %v181_v33 = vld [vmem:[%s6749_s1 + $0xa8] sm:$0xff] }
   0xb   :  { %v182_v34 = vld [vmem:[%s6749_s1 + $0xb0] sm:$0xff]  ;;  %v183_v35 = vld [vmem:[%s6749_s1 + $0xb8] sm:$0xff]  ;;  %v184_v36 = vld [vmem:[%s6749_s1 + $0xc0] sm:$0xff] }
   0xc   :  { %4285 = vmatmul.mubr.msk.f32.vlgmr.msra.gmra.mrb[0].mxu0 %vm292_vm0, %v161_v7  ;;  %v185_v37 = vld [vmem:[%s6749_s1 + $0xc8] sm:$0xff]  ;;  %v186_v38 = vld [vmem:[%s6749_s1 + $0xd0] sm:$0xff]  ;;  %v187_v39 = vld [vmem:[%s6749_s1 + $0xd8] sm:$0xff] }
   0xd   :  { %4287 = vmatprep.mubr.msk.f32.mxu0 %vm292_vm0, %v162_v8  ;;  %4687 = vmatpush3.bf16.msra.mxu0 %v4684_v15  ;;  %v188_v40 = vld [vmem:[%s6749_s1 + $0xe0] sm:$0xff]  ;;  %v189_v41 = vld [vmem:[%s6749_s1 + $0xe8] sm:$0xff]  ;;  %v190_v42 = vld [vmem:[%s6749_s1 + $0xf0] sm:$0xff] }
   0xe   :  { %4689 = vmatprep.subr.bf16.mxu0 %v4688_v19  ;;  %v191_v43 = vld [vmem:[%s6749_s1 + $0xf8] sm:$0xff]  ;;  %v192_v44 = vld [vmem:[%s6749_s1 + $0x100] sm:$0xff]  ;;  %v193_v45 = vld [vmem:[%s6749_s1 + $0x108] sm:$0xff] }
   0xf   :  { %v194_v46 = vld [vmem:[%s6749_s1 + $0x110] sm:$0xff]  ;;  %v195_v47 = vld [vmem:[%s6749_s1 + $0x118] sm:$0xff]  ;;  %v196_v48 = vld [vmem:[%s6749_s1 + $0x120] sm:$0xff] }
  0x10   :  { %4288 = vmatmul.mubr.msk.f32.gmra.mrb[2].mxu0 %vm292_vm0, %v163_v9  ;;  %v210_v49 = vld [vmem:[%s6749_s1 + $0x190] sm:$0xff]  ;;  %v197_v50 = vld [vmem:[%s6749_s1 + $0x128] sm:$0xff]  ;;  %v211_v51 = vld [vmem:[%s6749_s1 + $0x198] sm:$0xff] }
  0x11   :  { %4290 = vmatprep.mubr.msk.f32.mxu0 %vm292_vm0, %v164_v10  ;;  %4691 = vmatpush3.bf16.msra.mxu0 %v4688_v19  ;;  %v198_v52 = vld [vmem:[%s6749_s1 + $0x130] sm:$0xff]  ;;  %v212_v53 = vld [vmem:[%s6749_s1 + $0x1a0] sm:$0xff]  ;;  %v199_v54 = vld [vmem:[%s6749_s1 + $0x138] sm:$0xff] }
  0x12   :  { %4359 = vmatprep.mubr.msk.f32.mxu1 %vm292_vm0, %v210_v49  ;;  %v213_v55 = vld [vmem:[%s6749_s1 + $0x1a8] sm:$0xff]  ;;  %v200_v56 = vld [vmem:[%s6749_s1 + $0x140] sm:$0xff]  ;;  %v214_v57 = vld [vmem:[%s6749_s1 + $0x1b0] sm:$0xff] }
  0x13   :  { %4360 = vmatmul.mubr.msk.f32.vlgmr.msra.gmra.mrb[0].mxu1 %vm292_vm0, %v211_v51  ;;  %v201_v58 = vld [vmem:[%s6749_s1 + $0x148] sm:$0xff]  ;;  %v215_v59 = vld [vmem:[%s6749_s1 + $0x1b8] sm:$0xff]  ;;  %v202_v60 = vld [vmem:[%s6749_s1 + $0x150] sm:$0xff] }
  0x14   :  { %4291 = vmatmul.mubr.msk.f32.gmra.mrb[4].mxu0 %vm292_vm0, %v165_v11  ;;  %4362 = vmatprep.mubr.msk.f32.mxu1 %vm292_vm0, %v212_v53  ;;  %v216_v61 = vld [vmem:[%s6749_s1 + $0x1c0] sm:$0xff]  ;;  %v203_v62 = vld [vmem:[%s6749_s1 + $0x158] sm:$0xff]  ;;  %v217_v63 = vld [vmem:[%s6749_s1 + $0x1c8] sm:$0xff] }
  0x15   :  { %4293 = vmatprep.mubr.msk.f32.mxu0 %vm292_vm0, %v166_v13  ;;  %v204_v0 = vld [vmem:[%s6749_s1 + $0x160] sm:$0xff]  ;;  %v218_v1 = vld [vmem:[%s6749_s1 + $0x1d0] sm:$0xff]  ;;  %v205_v2 = vld [vmem:[%s6749_s1 + $0x168] sm:$0xff] }
  0x16   :  { %v219_v3 = vld [vmem:[%s6749_s1 + $0x1d8] sm:$0xff]  ;;  %v206_v4 = vld [vmem:[%s6749_s1 + $0x170] sm:$0xff]  ;;  %v220_v5 = vld [vmem:[%s6749_s1 + $0x1e0] sm:$0xff] }
  0x17   :  { %4363 = vmatmul.mubr.msk.f32.gmra.mrb[2].mxu1 %vm292_vm0, %v213_v55  ;;  %v207_v6 = vld [vmem:[%s6749_s1 + $0x178] sm:$0xff]  ;;  %v221_v7 = vld [vmem:[%s6749_s1 + $0x1e8] sm:$0xff]  ;;  %v208_v8 = vld [vmem:[%s6749_s1 + $0x180] sm:$0xff] }
  0x18   :  { %4294 = vmatmul.mubr.msk.f32.gmra.mrb[6].mxu0 %vm292_vm0, %v167_v18  ;;  %4365 = vmatprep.mubr.msk.f32.mxu1 %vm292_vm0, %v214_v57  ;;  %v222_v9 = vld [vmem:[%s6749_s1 + $0x1f0] sm:$0xff]  ;;  %v209_v10 = vld [vmem:[%s6749_s1 + $0x188] sm:$0xff]  ;;  %v223_v11 = vld [vmem:[%s6749_s1 + $0x1f8] sm:$0xff] }
  0x19   :  { %4296 = vmatprep.mubr.msk.f32.mxu0 %vm292_vm0, %v168_v20  ;;  %v28_v12 = vld [vmem:[%s6751_s0] sm:$0xff]  ;;  %v29_v14 = vld [vmem:[%s6751_s0 + $0x8] sm:$0xff]  ;;  %v30_v16 = vld [vmem:[%s6751_s0 + $0x10] sm:$0xff] }
  0x1a   :  { %v224_v13 = vld [vmem:[%s6749_s1 + $0x200] sm:$0xff]  ;;  %v225_v15 = vld [vmem:[%s6749_s1 + $0x208] sm:$0xff]  ;;  %v226_v17 = vld [vmem:[%s6749_s1 + $0x210] sm:$0xff] }
  0x1b   :  { %4366 = vmatmul.mubr.msk.f32.gmra.mrb[4].mxu1 %vm292_vm0, %v215_v59  ;;  %v31_v18 = vld [vmem:[%s6751_s0 + $0x18] sm:$0xff]  ;;  %v32_v20 = vld [vmem:[%s6751_s0 + $0x20] sm:$0xff]  ;;  %v242_v49 = vld [vmem:[%s6749_s1 + $0x290] sm:$0xff] }
  0x1c   :  { %4297 = vmatmul.mubr.msk.f32.gmra.mrb[8].mxu0 %vm292_vm0, %v169_v21  ;;  %4368 = vmatprep.mubr.msk.f32.mxu1 %vm292_vm0, %v216_v61  ;;  %v227_v19 = vld [vmem:[%s6749_s1 + $0x218] sm:$0xff]  ;;  %v228_v21 = vld [vmem:[%s6749_s1 + $0x220] sm:$0xff]  ;;  %v245_v55 = vld [vmem:[%s6749_s1 + $0x2a8] sm:$0xff] }
  0x1d   :  { %4299 = vmatprep.mubr.msk.f32.mxu0 %vm292_vm0, %v170_v22  ;;  %v33_v22 = vld [vmem:[%s6751_s0 + $0x28] sm:$0xff]  ;;  %v243_v51 = vld [vmem:[%s6749_s1 + $0x298] sm:$0xff]  ;;  %v244_v53 = vld [vmem:[%s6749_s1 + $0x2a0] sm:$0xff] }
  0x1e   :  { %v246_v57 = vld [vmem:[%s6749_s1 + $0x2b0] sm:$0xff]  ;;  %v247_v59 = vld [vmem:[%s6749_s1 + $0x2b8] sm:$0xff]  ;;  %v248_v61 = vld [vmem:[%s6749_s1 + $0x2c0] sm:$0xff] }
  0x1f   :  { %4369 = vmatmul.mubr.msk.f32.gmra.mrb[6].mxu1 %vm292_vm0, %v217_v63  ;;  %v249_v63 = vld [vmem:[%s6749_s1 + $0x2c8] sm:$0xff]  ;;  %vm6222_vm1 = vmpackc.low %vm292_vm0, %vm292_vm0 }
  0x20   :  { %4300 = vmatmul.mubr.msk.f32.gmra.mrb[10].mxu0 %vm292_vm0, %v171_v23  ;;  %4371 = vmatprep.mubr.msk.f32.mxu1 %vm292_vm0, %v218_v1  ;;  %v229_v23 = vld [vmem:[%s6749_s1 + $0x228] sm:$0xff]  ;;  %v250_v1 = vld [vmem:[%s6749_s1 + $0x2d0] sm:$0xff] }
  0x21   :  { %4302 = vmatprep.mubr.msk.f32.mxu0 %vm292_vm0, %v172_v24  ;;  %v34_v24 = vld [vmem:[%s6751_s0 + $0x30] sm:$0xff] }
  0x23   :  { %4372 = vmatmul.mubr.msk.f32.gmra.mrb[8].mxu1 %vm292_vm0, %v219_v3  ;;  %v251_v3 = vld [vmem:[%s6749_s1 + $0x2d8] sm:$0xff] }
  0x24   :  { %4303 = vmatmul.mubr.msk.f32.gmra.mrb[12].mxu0 %vm292_vm0, %v173_v25  ;;  %4374 = vmatprep.mubr.msk.f32.mxu1 %vm292_vm0, %v220_v5  ;;  %v230_v25 = vld [vmem:[%s6749_s1 + $0x230] sm:$0xff]  ;;  %v252_v5 = vld [vmem:[%s6749_s1 + $0x2e0] sm:$0xff] }
  0x25   :  { %4305 = vmatprep.mubr.msk.f32.mxu0 %vm292_vm0, %v174_v26  ;;  %v35_v26 = vld [vmem:[%s6751_s0 + $0x38] sm:$0xff] }
  0x27   :  { %4375 = vmatmul.mubr.msk.f32.gmra.mrb[10].mxu1 %vm292_vm0, %v221_v7  ;;  %v253_v7 = vld [vmem:[%s6749_s1 + $0x2e8] sm:$0xff] }
  0x28   :  { %4306 = vmatmul.mubr.msk.f32.gmra.mrb[14].mxu0 %vm292_vm0, %v175_v27  ;;  %4377 = vmatprep.mubr.msk.f32.mxu1 %vm292_vm0, %v222_v9  ;;  %v231_v27 = vld [vmem:[%s6749_s1 + $0x238] sm:$0xff]  ;;  %v254_v9 = vld [vmem:[%s6749_s1 + $0x2f0] sm:$0xff] }
  0x29   :  { %4308 = vmatprep.mubr.msk.f32.mxu0 %vm292_vm0, %v176_v28  ;;  %v36_v28 = vld [vmem:[%s6751_s0 + $0x40] sm:$0xff] }
  0x2b   :  { %4378 = vmatmul.mubr.msk.f32.gmra.mrb[12].mxu1 %vm292_vm0, %v223_v11  ;;  %v255_v11 = vld [vmem:[%s6749_s1 + $0x2f8] sm:$0xff] }
  0x2c   :  { %4309 = vmatmul.mubr.msk.f32.gmra.mrb[16].mxu0 %vm292_vm0, %v177_v29  ;;  %4380 = vmatprep.mubr.msk.f32.mxu1 %vm292_vm0, %v224_v13  ;;  %v232_v29 = vld [vmem:[%s6749_s1 + $0x240] sm:$0xff] }
  0x2d   :  { %4311 = vmatprep.mubr.msk.f32.mxu0 %vm292_vm0, %v178_v30  ;;  %v37_v30 = vld [vmem:[%s6751_s0 + $0x48] sm:$0xff]  ;;  %v256_v13 = vld [vmem:[%s6749_s1 + $0x300] sm:$0xff] }
  0x2f   :  { %4381 = vmatmul.mubr.msk.f32.gmra.mrb[14].mxu1 %vm292_vm0, %v225_v15  ;;  %v257_v15 = vld [vmem:[%s6749_s1 + $0x308] sm:$0xff] }
  0x30   :  { %4312 = vmatmul.mubr.msk.f32.gmra.mrb[18].mxu0 %vm292_vm0, %v179_v31  ;;  %4383 = vmatprep.mubr.msk.f32.mxu1 %vm292_vm0, %v226_v17  ;;  %v233_v31 = vld [vmem:[%s6749_s1 + $0x248] sm:$0xff]  ;;  %v258_v17 = vld [vmem:[%s6749_s1 + $0x310] sm:$0xff] }
  0x31   :  { %4314 = vmatprep.mubr.msk.f32.mxu0 %vm292_vm0, %v180_v32  ;;  %v38_v32 = vld [vmem:[%s6751_s0 + $0x50] sm:$0xff] }
  0x33   :  { %4384 = vmatmul.mubr.msk.f32.gmra.mrb[16].mxu1 %vm292_vm0, %v227_v19  ;;  %v259_v19 = vld [vmem:[%s6749_s1 + $0x318] sm:$0xff] }
  0x34   :  { %4315 = vmatmul.mubr.msk.f32.gmra.mrb[20].mxu0 %vm292_vm0, %v181_v33  ;;  %4386 = vmatprep.mubr.msk.f32.mxu1 %vm292_vm0, %v228_v21  ;;  %v234_v33 = vld [vmem:[%s6749_s1 + $0x250] sm:$0xff]  ;;  %v260_v21 = vld [vmem:[%s6749_s1 + $0x320] sm:$0xff] }
  0x35   :  { %4317 = vmatprep.mubr.msk.f32.mxu0 %vm292_vm0, %v182_v34  ;;  %v39_v34 = vld [vmem:[%s6751_s0 + $0x58] sm:$0xff] }
  0x37   :  { %4387 = vmatmul.mubr.msk.f32.gmra.mrb[18].mxu1 %vm292_vm0, %v229_v23  ;;  %v261_v23 = vld [vmem:[%s6749_s1 + $0x328] sm:$0xff] }
  0x38   :  { %4318 = vmatmul.mubr.msk.f32.gmra.mrb[22].mxu0 %vm292_vm0, %v183_v35  ;;  %4389 = vmatprep.mubr.msk.f32.mxu1 %vm292_vm0, %v230_v25  ;;  %v235_v35 = vld [vmem:[%s6749_s1 + $0x258] sm:$0xff]  ;;  %v262_v25 = vld [vmem:[%s6749_s1 + $0x330] sm:$0xff] }
  0x39   :  { %4320 = vmatprep.mubr.msk.f32.mxu0 %vm292_vm0, %v184_v36  ;;  %v40_v36 = vld [vmem:[%s6751_s0 + $0x60] sm:$0xff] }
  0x3b   :  { %4390 = vmatmul.mubr.msk.f32.gmra.mrb[20].mxu1 %vm292_vm0, %v231_v27  ;;  %v263_v27 = vld [vmem:[%s6749_s1 + $0x338] sm:$0xff] }
  0x3c   :  { %4321 = vmatmul.mubr.msk.f32.gmra.mrb[24].mxu0 %vm292_vm0, %v185_v37  ;;  %4392 = vmatprep.mubr.msk.f32.mxu1 %vm292_vm0, %v232_v29  ;;  %v236_v37 = vld [vmem:[%s6749_s1 + $0x260] sm:$0xff] }
  0x3d   :  { %4323 = vmatprep.mubr.msk.f32.mxu0 %vm292_vm0, %v186_v38  ;;  %v41_v38 = vld [vmem:[%s6751_s0 + $0x68] sm:$0xff]  ;;  %v264_v29 = vld [vmem:[%s6749_s1 + $0x340] sm:$0xff] }
  0x3f   :  { %4393 = vmatmul.mubr.msk.f32.gmra.mrb[22].mxu1 %vm292_vm0, %v233_v31  ;;  %v265_v31 = vld [vmem:[%s6749_s1 + $0x348] sm:$0xff] }
  0x40   :  { %4324 = vmatmul.mubr.msk.f32.gmra.mrb[26].mxu0 %vm292_vm0, %v187_v39  ;;  %4395 = vmatprep.mubr.msk.f32.mxu1 %vm292_vm0, %v234_v33  ;;  %v237_v39 = vld [vmem:[%s6749_s1 + $0x268] sm:$0xff]  ;;  %v266_v33 = vld [vmem:[%s6749_s1 + $0x350] sm:$0xff] }
  0x41   :  { %4326 = vmatprep.mubr.msk.f32.mxu0 %vm292_vm0, %v188_v40  ;;  %v42_v40 = vld [vmem:[%s6751_s0 + $0x70] sm:$0xff] }
  0x43   :  { %4396 = vmatmul.mubr.msk.f32.gmra.mrb[24].mxu1 %vm292_vm0, %v235_v35  ;;  %v72_v35 = vld [vmem:[%s6751_s0 + $0x160] sm:$0xff] }
  0x44   :  { %4327 = vmatmul.mubr.msk.f32.gmra.mrb[28].mxu0 %vm292_vm0, %v189_v41  ;;  %4398 = vmatprep.mubr.msk.f32.mxu1 %vm292_vm0, %v236_v37  ;;  %v238_v41 = vld [vmem:[%s6749_s1 + $0x270] sm:$0xff]  ;;  %v73_v37 = vld [vmem:[%s6751_s0 + $0x168] sm:$0xff] }
  0x45   :  { %4329 = vmatprep.mubr.msk.f32.mxu0 %vm292_vm0, %v190_v42  ;;  %v43_v42 = vld [vmem:[%s6751_s0 + $0x78] sm:$0xff] }
  0x47   :  { %4399 = vmatmul.mubr.msk.f32.gmra.mrb[26].mxu1 %vm292_vm0, %v237_v39  ;;  %v74_v39 = vld [vmem:[%s6751_s0 + $0x170] sm:$0xff] }
  0x48   :  { %4330 = vmatmul.mubr.msk.f32.gmra.mrb[30].mxu0 %vm292_vm0, %v191_v43  ;;  %4401 = vmatprep.mubr.msk.f32.mxu1 %vm292_vm0, %v238_v41  ;;  %v239_v43 = vld [vmem:[%s6749_s1 + $0x278] sm:$0xff] }
  0x49   :  { %4332 = vmatprep.mubr.msk.f32.mxu0 %vm292_vm0, %v192_v44  ;;  %v44_v44 = vld [vmem:[%s6751_s0 + $0x80] sm:$0xff]  ;;  %v75_v41 = vld [vmem:[%s6751_s0 + $0x178] sm:$0xff] }
  0x4b   :  { %4402 = vmatmul.mubr.msk.f32.gmra.mrb[28].mxu1 %vm292_vm0, %v239_v43  ;;  %v76_v43 = vld [vmem:[%s6751_s0 + $0x180] sm:$0xff] }
  0x4c   :  { %4333 = vmatmul.mubr.msk.f32.gmra.mrb[32].mxu0 %vm292_vm0, %v193_v45  ;;  %v240_v45 = vld [vmem:[%s6749_s1 + $0x280] sm:$0xff] }
  0x4d   :  { %4335 = vmatprep.mubr.msk.f32.mxu0 %vm292_vm0, %v194_v46  ;;  %v45_v46 = vld [vmem:[%s6751_s0 + $0x88] sm:$0xff]  ;;  %4404 = vmatprep.mubr.msk.f32.mxu1 %vm292_vm0, %v240_v45 }
  0x4e   :  { %v77_v45 = vld [vmem:[%s6751_s0 + $0x188] sm:$0xff] }
  0x50   :  { %4336 = vmatmul.mubr.msk.f32.gmra.mrb[34].mxu0 %vm292_vm0, %v195_v47  ;;  %v241_v47 = vld [vmem:[%s6749_s1 + $0x288] sm:$0xff] }
  0x51   :  { %4338 = vmatprep.mubr.msk.f32.mxu0 %vm292_vm0, %v196_v48  ;;  %v46_v48 = vld [vmem:[%s6751_s0 + $0x90] sm:$0xff]  ;;  %4405 = vmatmul.mubr.msk.f32.gmra.mrb[30].mxu1 %vm292_vm0, %v241_v47 }
  0x52   :  { %4407 = vmatprep.mubr.msk.f32.mxu1 %vm292_vm0, %v242_v49  ;;  %v78_v47 = vld [vmem:[%s6751_s0 + $0x190] sm:$0xff]  ;;  %v79_v49 = vld [vmem:[%s6751_s0 + $0x198] sm:$0xff] }
  0x54   :  { %4339 = vmatmul.mubr.msk.f32.gmra.mrb[36].mxu0 %vm292_vm0, %v197_v50  ;;  %v47_v50 = vld [vmem:[%s6751_s0 + $0x98] sm:$0xff] }
  0x55   :  { %4341 = vmatprep.mubr.msk.f32.mxu0 %vm292_vm0, %v198_v52  ;;  %v48_v52 = vld [vmem:[%s6751_s0 + $0xa0] sm:$0xff]  ;;  %4408 = vmatmul.mubr.msk.f32.gmra.mrb[32].mxu1 %vm292_vm0, %v243_v51  ;;  %v81_v51 = vld [vmem:[%s6751_s0 + $0x1a8] sm:$0xff] }
  0x56   :  { %4410 = vmatprep.mubr.msk.f32.mxu1 %vm292_vm0, %v244_v53  ;;  %v82_v53 = vld [vmem:[%s6751_s0 + $0x1b0] sm:$0xff] }
  0x58   :  { %4342 = vmatmul.mubr.msk.f32.gmra.mrb[38].mxu0 %vm292_vm0, %v199_v54  ;;  %v49_v54 = vld [vmem:[%s6751_s0 + $0xa8] sm:$0xff] }
  0x59   :  { %4344 = vmatprep.mubr.msk.f32.mxu0 %vm292_vm0, %v200_v56  ;;  %v50_v56 = vld [vmem:[%s6751_s0 + $0xb0] sm:$0xff]  ;;  %4411 = vmatmul.mubr.msk.f32.gmra.mrb[34].mxu1 %vm292_vm0, %v245_v55  ;;  %v83_v55 = vld [vmem:[%s6751_s0 + $0x1b8] sm:$0xff] }
  0x5a   :  { %4413 = vmatprep.mubr.msk.f32.mxu1 %vm292_vm0, %v246_v57  ;;  %v85_v57 = vld [vmem:[%s6751_s0 + $0x1c8] sm:$0xff] }
  0x5c   :  { %4345 = vmatmul.mubr.msk.f32.gmra.mrb[40].mxu0 %vm292_vm0, %v201_v58  ;;  %v51_v58 = vld [vmem:[%s6751_s0 + $0xb8] sm:$0xff] }
  0x5d   :  { %4347 = vmatprep.mubr.msk.f32.mxu0 %vm292_vm0, %v202_v60  ;;  %v52_v60 = vld [vmem:[%s6751_s0 + $0xc0] sm:$0xff]  ;;  %4414 = vmatmul.mubr.msk.f32.gmra.mrb[36].mxu1 %vm292_vm0, %v247_v59  ;;  %v86_v59 = vld [vmem:[%s6751_s0 + $0x1d0] sm:$0xff] }
  0x5e   :  { %4416 = vmatprep.mubr.msk.f32.mxu1 %vm292_vm0, %v248_v61  ;;  %v87_v61 = vld [vmem:[%s6751_s0 + $0x1d8] sm:$0xff] }
  0x60   :  { %4348 = vmatmul.mubr.msk.f32.gmra.mrb[42].mxu0 %vm292_vm0, %v203_v62  ;;  %v53_v62 = vld [vmem:[%s6751_s0 + $0xc8] sm:$0xff] }
  0x61   :  { %4350 = vmatprep.mubr.msk.f32.mxu0 %vm292_vm0, %v204_v0  ;;  %v54_v0 = vld [vmem:[%s6751_s0 + $0xd0] sm:$0xff]  ;;  %4417 = vmatmul.mubr.msk.f32.gmra.mrb[38].mxu1 %vm292_vm0, %v249_v63  ;;  %v89_v63 = vld [vmem:[%s6751_s0 + $0x1e8] sm:$0xff] }
  0x62   :  { %4419 = vmatprep.mubr.msk.f32.mxu1 %vm292_vm0, %v250_v1  ;;  %v90_v1 = vld [vmem:[%s6751_s0 + $0x1f0] sm:$0xff] }
  0x64   :  { %4351 = vmatmul.mubr.msk.f32.gmra.mrb[44].mxu0 %vm292_vm0, %v205_v2  ;;  %v55_v2 = vld [vmem:[%s6751_s0 + $0xd8] sm:$0xff] }
  0x65   :  { %4353 = vmatprep.mubr.msk.f32.mxu0 %vm292_vm0, %v206_v4  ;;  %v56_v4 = vld [vmem:[%s6751_s0 + $0xe0] sm:$0xff]  ;;  %4420 = vmatmul.mubr.msk.f32.gmra.mrb[40].mxu1 %vm292_vm0, %v251_v3  ;;  %v91_v3 = vld [vmem:[%s6751_s0 + $0x1f8] sm:$0xff] }
  0x66   :  { %4422 = vmatprep.mubr.msk.f32.mxu1 %vm292_vm0, %v252_v5  ;;  %v93_v5 = vld [vmem:[%s6751_s0 + $0x208] sm:$0xff] }
  0x68   :  { %4354 = vmatmul.mubr.msk.f32.gmra.mrb[46].mxu0 %vm292_vm0, %v207_v6  ;;  %v57_v6 = vld [vmem:[%s6751_s0 + $0xe8] sm:$0xff] }
  0x69   :  { %4356 = vmatprep.mubr.msk.f32.mxu0 %vm292_vm0, %v208_v8  ;;  %v58_v8 = vld [vmem:[%s6751_s0 + $0xf0] sm:$0xff]  ;;  %4423 = vmatmul.mubr.msk.f32.gmra.mrb[42].mxu1 %vm292_vm0, %v253_v7 }
  0x6a   :  { %4425 = vmatprep.mubr.msk.f32.mxu1 %vm292_vm0, %v254_v9  ;;  %v94_v7 = vld [vmem:[%s6751_s0 + $0x210] sm:$0xff]  ;;  %v95_v9 = vld [vmem:[%s6751_s0 + $0x218] sm:$0xff] }
  0x6c   :  { %4357 = vmatmul.mubr.msk.f32.gmra.mrb[48].mxu0 %vm292_vm0, %v209_v10  ;;  %v59_v10 = vld [vmem:[%s6751_s0 + $0xf8] sm:$0xff] }
  0x6d   :  { %4484 = vmatprep.mubr.msk.f32.mxu0 %vm292_vm0, %v28_v12  ;;  %v60_v12 = vld [vmem:[%s6751_s0 + $0x100] sm:$0xff]  ;;  %4426 = vmatmul.mubr.msk.f32.gmra.mrb[44].mxu1 %vm292_vm0, %v255_v11  ;;  %v97_v11 = vld [vmem:[%s6751_s0 + $0x228] sm:$0xff] }
  0x6e   :  { %4428 = vmatprep.mubr.msk.f32.mxu1 %vm292_vm0, %v256_v13  ;;  %v98_v13 = vld [vmem:[%s6751_s0 + $0x230] sm:$0xff] }
  0x70   :  { %4485 = vmatmul.mubr.msk.f32.vlgmr.msra.gmra.mrb[0].mxu0 %vm292_vm0, %v29_v14  ;;  %v61_v14 = vld [vmem:[%s6751_s0 + $0x108] sm:$0xff] }
  0x71   :  { %4487 = vmatprep.mubr.msk.f32.mxu0 %vm292_vm0, %v30_v16  ;;  %v62_v16 = vld [vmem:[%s6751_s0 + $0x110] sm:$0xff]  ;;  %4429 = vmatmul.mubr.msk.f32.gmra.mrb[46].mxu1 %vm292_vm0, %v257_v15  ;;  %v99_v15 = vld [vmem:[%s6751_s0 + $0x238] sm:$0xff] }
  0x72   :  { %4431 = vmatprep.mubr.msk.f32.mxu1 %vm292_vm0, %v258_v17  ;;  %v101_v17 = vld [vmem:[%s6751_s0 + $0x248] sm:$0xff] }
  0x74   :  { %4488 = vmatmul.mubr.msk.f32.gmra.mrb[2].mxu0 %vm292_vm0, %v31_v18  ;;  %v63_v18 = vld [vmem:[%s6751_s0 + $0x118] sm:$0xff] }
  0x75   :  { %4490 = vmatprep.mubr.msk.f32.mxu0 %vm292_vm0, %v32_v20  ;;  %v64_v20 = vld [vmem:[%s6751_s0 + $0x120] sm:$0xff]  ;;  %4432 = vmatmul.mubr.msk.f32.gmra.mrb[48].mxu1 %vm292_vm0, %v259_v19  ;;  %v102_v19 = vld [vmem:[%s6751_s0 + $0x250] sm:$0xff] }
  0x76   :  { %4434 = vmatprep.mubr.msk.f32.mxu1 %vm292_vm0, %v260_v21  ;;  %v103_v21 = vld [vmem:[%s6751_s0 + $0x258] sm:$0xff] }
  0x78   :  { %4491 = vmatmul.mubr.msk.f32.gmra.mrb[4].mxu0 %vm292_vm0, %v33_v22  ;;  %v65_v22 = vld [vmem:[%s6751_s0 + $0x128] sm:$0xff] }
  0x79   :  { %4493 = vmatprep.mubr.msk.f32.mxu0 %vm292_vm0, %v34_v24  ;;  %v66_v24 = vld [vmem:[%s6751_s0 + $0x130] sm:$0xff]  ;;  %4435 = vmatmul.mubr.msk.f32.gmra.mrb[50].mxu1 %vm292_vm0, %v261_v23  ;;  %v105_v23 = vld [vmem:[%s6751_s0 + $0x268] sm:$0xff] }
  0x7a   :  { %4437 = vmatprep.mubr.msk.f32.mxu1 %vm292_vm0, %v262_v25  ;;  %v106_v25 = vld [vmem:[%s6751_s0 + $0x270] sm:$0xff] }
  0x7c   :  { %4494 = vmatmul.mubr.msk.f32.gmra.mrb[6].mxu0 %vm292_vm0, %v35_v26  ;;  %v67_v26 = vld [vmem:[%s6751_s0 + $0x138] sm:$0xff] }
  0x7d   :  { %4496 = vmatprep.mubr.msk.f32.mxu0 %vm292_vm0, %v36_v28  ;;  %v68_v28 = vld [vmem:[%s6751_s0 + $0x140] sm:$0xff]  ;;  %4438 = vmatmul.mubr.msk.f32.gmra.mrb[52].mxu1 %vm292_vm0, %v263_v27  ;;  %v107_v27 = vld [vmem:[%s6751_s0 + $0x278] sm:$0xff] }
  0x7e   :  { %4440 = vmatprep.mubr.msk.f32.mxu1 %vm292_vm0, %v264_v29  ;;  %v109_v29 = vld [vmem:[%s6751_s0 + $0x288] sm:$0xff] }
  0x80   :  { %4497 = vmatmul.mubr.msk.f32.gmra.mrb[8].mxu0 %vm292_vm0, %v37_v30  ;;  %v69_v30 = vld [vmem:[%s6751_s0 + $0x148] sm:$0xff] }
  0x81   :  { %4499 = vmatprep.mubr.msk.f32.mxu0 %vm292_vm0, %v38_v32  ;;  %v70_v32 = vld [vmem:[%s6751_s0 + $0x150] sm:$0xff]  ;;  %4441 = vmatmul.mubr.msk.f32.gmra.mrb[54].mxu1 %vm292_vm0, %v265_v31  ;;  %v111_v31 = vld [vmem:[%s6751_s0 + $0x298] sm:$0xff] }
  0x82   :  { %4443 = vmatprep.mubr.msk.f32.mxu1 %vm292_vm0, %v266_v33  ;;  %v113_v33 = vld [vmem:[%s6751_s0 + $0x2a8] sm:$0xff] }
  0x84   :  { %4500 = vmatmul.mubr.msk.f32.gmra.mrb[10].mxu0 %vm292_vm0, %v39_v34  ;;  %v71_v34 = vld [vmem:[%s6751_s0 + $0x158] sm:$0xff] }
  0x85   :  { %4502 = vmatprep.mubr.msk.f32.mxu0 %vm292_vm0, %v40_v36  ;;  %v267_v36 = vld [vmem:[%s6749_s1 + $0x358] sm:$0xff] }
  0x86   :  { %4444 = vmatmul.mubr.msk.f32.gmra.mrb[56].mxu1 %vm292_vm0, %v267_v36  ;;  %v116_v36 = vld [vmem:[%s6751_s0 + $0x2c0] sm:$0xff] }
  0x88   :  { %4503 = vmatmul.mubr.msk.f32.gmra.mrb[12].mxu0 %vm292_vm0, %v41_v38  ;;  %v268_v38 = vld [vmem:[%s6749_s1 + $0x360] sm:$0xff] }
  0x89   :  { %4505 = vmatprep.mubr.msk.f32.mxu0 %vm292_vm0, %v42_v40  ;;  %4446 = vmatprep.mubr.msk.f32.mxu1 %vm292_vm0, %v268_v38  ;;  %v269_v40 = vld [vmem:[%s6749_s1 + $0x368] sm:$0xff]  ;;  %v118_v38 = vld [vmem:[%s6751_s0 + $0x2d0] sm:$0xff] }
  0x8a   :  { %4447 = vmatmul.mubr.msk.f32.gmra.mrb[58].mxu1 %vm292_vm0, %v269_v40  ;;  %v120_v40 = vld [vmem:[%s6751_s0 + $0x2e0] sm:$0xff] }
  0x8c   :  { %4506 = vmatmul.mubr.msk.f32.gmra.mrb[14].mxu0 %vm292_vm0, %v43_v42  ;;  %v270_v42 = vld [vmem:[%s6749_s1 + $0x370] sm:$0xff] }
  0x8d   :  { %4508 = vmatprep.mubr.msk.f32.mxu0 %vm292_vm0, %v44_v44  ;;  %4449 = vmatprep.mubr.msk.f32.mxu1 %vm292_vm0, %v270_v42  ;;  %v271_v44 = vld [vmem:[%s6749_s1 + $0x378] sm:$0xff]  ;;  %v122_v42 = vld [vmem:[%s6751_s0 + $0x2f0] sm:$0xff] }
  0x8e   :  { %4450 = vmatmul.mubr.msk.f32.gmra.mrb[60].mxu1 %vm292_vm0, %v271_v44 }
  0x90   :  { %4509 = vmatmul.mubr.msk.f32.gmra.mrb[16].mxu0 %vm292_vm0, %v45_v46  ;;  %v272_v46 = vld [vmem:[%s6749_s1 + $0x380] sm:$0xff] }
  0x91   :  { %4511 = vmatprep.mubr.msk.f32.mxu0 %vm292_vm0, %v46_v48  ;;  %4452 = vmatprep.mubr.msk.f32.mxu1 %vm292_vm0, %v272_v46  ;;  %v273_v48 = vld [vmem:[%s6749_s1 + $0x388] sm:$0xff]  ;;  %v124_v46 = vld [vmem:[%s6751_s0 + $0x300] sm:$0xff] }
  0x92   :  { %4453 = vmatmul.mubr.msk.f32.gmra.mrb[62].mxu1 %vm292_vm0, %v273_v48 }
  0x94   :  { %4512 = vmatmul.mubr.msk.f32.gmra.mrb[18].mxu0 %vm292_vm0, %v47_v50  ;;  %v80_v50 = vld [vmem:[%s6751_s0 + $0x1a0] sm:$0xff] }
  0x95   :  { %4514 = vmatprep.mubr.msk.f32.mxu0 %vm292_vm0, %v48_v52  ;;  %v274_v52 = vld [vmem:[%s6749_s1 + $0x390] sm:$0xff] }
  0x96   :  { %4455 = vmatprep.mubr.msk.f32.mxu1 %vm292_vm0, %v274_v52 }
  0x98   :  { %4515 = vmatmul.mubr.msk.f32.gmra.mrb[20].mxu0 %vm292_vm0, %v49_v54  ;;  %v275_v54 = vld [vmem:[%s6749_s1 + $0x398] sm:$0xff] }
  0x99   :  { %4517 = vmatprep.mubr.msk.f32.mxu0 %vm292_vm0, %v50_v56  ;;  %4456 = vmatmul.mubr.msk.f32.gmra.mrb[64].mxu1 %vm292_vm0, %v275_v54  ;;  %v84_v56 = vld [vmem:[%s6751_s0 + $0x1c0] sm:$0xff]  ;;  %v127_v54 = vld [vmem:[%s6751_s0 + $0x318] sm:$0xff] }
  0x9c   :  { %4518 = vmatmul.mubr.msk.f32.gmra.mrb[22].mxu0 %vm292_vm0, %v51_v58  ;;  %v276_v58 = vld [vmem:[%s6749_s1 + $0x3a0] sm:$0xff] }
  0x9d   :  { %4520 = vmatprep.mubr.msk.f32.mxu0 %vm292_vm0, %v52_v60  ;;  %4458 = vmatprep.mubr.msk.f32.mxu1 %vm292_vm0, %v276_v58  ;;  %v277_v60 = vld [vmem:[%s6749_s1 + $0x3a8] sm:$0xff] }
  0x9e   :  { %4459 = vmatmul.mubr.msk.f32.gmra.mrb[66].mxu1 %vm292_vm0, %v277_v60  ;;  %v129_v58 = vld [vmem:[%s6751_s0 + $0x328] sm:$0xff] }
  0xa0   :  { %4521 = vmatmul.mubr.msk.f32.gmra.mrb[24].mxu0 %vm292_vm0, %v53_v62  ;;  %v88_v62 = vld [vmem:[%s6751_s0 + $0x1e0] sm:$0xff] }
  0xa1   :  { %4523 = vmatprep.mubr.msk.f32.mxu0 %vm292_vm0, %v54_v0  ;;  %v278_v0 = vld [vmem:[%s6749_s1 + $0x3b0] sm:$0xff] }
  0xa2   :  { %4461 = vmatprep.mubr.msk.f32.mxu1 %vm292_vm0, %v278_v0 }
  0xa4   :  { %4524 = vmatmul.mubr.msk.f32.gmra.mrb[26].mxu0 %vm292_vm0, %v55_v2  ;;  %v279_v2 = vld [vmem:[%s6749_s1 + $0x3b8] sm:$0xff] }
  0xa5   :  { %4526 = vmatprep.mubr.msk.f32.mxu0 %vm292_vm0, %v56_v4  ;;  %4462 = vmatmul.mubr.msk.f32.gmra.mrb[68].mxu1 %vm292_vm0, %v279_v2  ;;  %v92_v4 = vld [vmem:[%s6751_s0 + $0x200] sm:$0xff]  ;;  %v133_v2 = vld [vmem:[%s6751_s0 + $0x348] sm:$0xff] }
  0xa8   :  { %4527 = vmatmul.mubr.msk.f32.gmra.mrb[28].mxu0 %vm292_vm0, %v57_v6  ;;  %v280_v6 = vld [vmem:[%s6749_s1 + $0x3c0] sm:$0xff] }
  0xa9   :  { %4529 = vmatprep.mubr.msk.f32.mxu0 %vm292_vm0, %v58_v8  ;;  %4464 = vmatprep.mubr.msk.f32.mxu1 %vm292_vm0, %v280_v6  ;;  %v281_v8 = vld [vmem:[%s6749_s1 + $0x3c8] sm:$0xff]  ;;  %v6064_v6 = vld [vmem:[%s6753_s4] ss:$0 sm:$0xff] }
  0xaa   :  { %4465 = vmatmul.mubr.msk.f32.gmra.mrb[70].mxu1 %vm292_vm0, %v281_v8  ;;  %v136_v8 = vld [vmem:[%s6751_s0 + $0x360] sm:$0xff] }
  0xac   :  { %4530 = vmatmul.mubr.msk.f32.gmra.mrb[30].mxu0 %vm292_vm0, %v59_v10  ;;  %v96_v10 = vld [vmem:[%s6751_s0 + $0x220] sm:$0xff] }
  0xad   :  { %4532 = vmatprep.mubr.msk.f32.mxu0 %vm292_vm0, %v60_v12  ;;  %v282_v12 = vld [vmem:[%s6749_s1 + $0x3d0] sm:$0xff] }
  0xae   :  { %4467 = vmatprep.mubr.msk.f32.mxu1 %vm292_vm0, %v282_v12 }
  0xb0   :  { %4533 = vmatmul.mubr.msk.f32.gmra.mrb[32].mxu0 %vm292_vm0, %v61_v14  ;;  %v283_v14 = vld [vmem:[%s6749_s1 + $0x3d8] sm:$0xff] }
  0xb1   :  { %4535 = vmatprep.mubr.msk.f32.mxu0 %vm292_vm0, %v62_v16  ;;  %4468 = vmatmul.mubr.msk.f32.gmra.mrb[72].mxu1 %vm292_vm0, %v283_v14  ;;  %v100_v16 = vld [vmem:[%s6751_s0 + $0x240] sm:$0xff] }
  0xb4   :  { %4536 = vmatmul.mubr.msk.f32.gmra.mrb[34].mxu0 %vm292_vm0, %v63_v18  ;;  %v284_v18 = vld [vmem:[%s6749_s1 + $0x3e0] sm:$0xff] }
  0xb5   :  { %4538 = vmatprep.mubr.msk.f32.mxu0 %vm292_vm0, %v64_v20  ;;  %4470 = vmatprep.mubr.msk.f32.mxu1 %vm292_vm0, %v284_v18  ;;  %v285_v20 = vld [vmem:[%s6749_s1 + $0x3e8] sm:$0xff] }
  0xb6   :  { %4471 = vmatmul.mubr.msk.f32.gmra.mrb[74].mxu1 %vm292_vm0, %v285_v20 }
  0xb8   :  { %4539 = vmatmul.mubr.msk.f32.gmra.mrb[36].mxu0 %vm292_vm0, %v65_v22  ;;  %v104_v22 = vld [vmem:[%s6751_s0 + $0x260] sm:$0xff] }
  0xb9   :  { %4541 = vmatprep.mubr.msk.f32.mxu0 %vm292_vm0, %v66_v24  ;;  %v286_v24 = vld [vmem:[%s6749_s1 + $0x3f0] sm:$0xff] }
  0xba   :  { %4473 = vmatprep.mubr.msk.f32.mxu1 %vm292_vm0, %v286_v24 }
  0xbc   :  { %4542 = vmatmul.mubr.msk.f32.gmra.mrb[38].mxu0 %vm292_vm0, %v67_v26  ;;  %v287_v26 = vld [vmem:[%s6749_s1 + $0x3f8] sm:$0xff] }
  0xbd   :  { %4544 = vmatprep.mubr.msk.f32.mxu0 %vm292_vm0, %v68_v28  ;;  %4474 = vmatmul.mubr.msk.f32.gmra.mrb[76].mxu1 %vm292_vm0, %v287_v26  ;;  %v108_v28 = vld [vmem:[%s6751_s0 + $0x280] sm:$0xff]  ;;  %v139_v26 = vld [vmem:[%s6751_s0 + $0x378] sm:$0xff] }
  0xc0   :  { %4545 = vmatmul.mubr.msk.f32.gmra.mrb[40].mxu0 %vm292_vm0, %v69_v30  ;;  %v110_v30 = vld [vmem:[%s6751_s0 + $0x290] sm:$0xff] }
  0xc1   :  { %4547 = vmatprep.mubr.msk.f32.mxu0 %vm292_vm0, %v70_v32  ;;  %v112_v32 = vld [vmem:[%s6751_s0 + $0x2a0] sm:$0xff] }
  0xc4   :  { %4548 = vmatmul.mubr.msk.f32.gmra.mrb[42].mxu0 %vm292_vm0, %v71_v34  ;;  %v114_v34 = vld [vmem:[%s6751_s0 + $0x2b0] sm:$0xff] }
  0xc5   :  { %4550 = vmatprep.mubr.msk.f32.mxu0 %vm292_vm0, %v72_v35  ;;  %v115_v35 = vld [vmem:[%s6751_s0 + $0x2b8] sm:$0xff] }
  0xc8   :  { %4551 = vmatmul.mubr.msk.f32.gmra.mrb[44].mxu0 %vm292_vm0, %v73_v37  ;;  %v117_v37 = vld [vmem:[%s6751_s0 + $0x2c8] sm:$0xff] }
  0xc9   :  { %4553 = vmatprep.mubr.msk.f32.mxu0 %vm292_vm0, %v74_v39  ;;  %v119_v39 = vld [vmem:[%s6751_s0 + $0x2d8] sm:$0xff] }
  0xcc   :  { %4554 = vmatmul.mubr.msk.f32.gmra.mrb[46].mxu0 %vm292_vm0, %v75_v41  ;;  %v121_v41 = vld [vmem:[%s6751_s0 + $0x2e8] sm:$0xff] }
  0xcd   :  { %4556 = vmatprep.mubr.msk.f32.mxu0 %vm292_vm0, %v76_v43 }
  0xd0   :  { %4557 = vmatmul.mubr.msk.f32.gmra.mrb[48].mxu0 %vm292_vm0, %v77_v45  ;;  %v123_v45 = vld [vmem:[%s6751_s0 + $0x2f8] sm:$0xff] }
  0xd1   :  { %4559 = vmatprep.mubr.msk.f32.mxu0 %vm292_vm0, %v78_v47  ;;  %v5992_v47 = vld [vmem:[%s6752_s5] sm:$0xff] }
  0xd2   :  { %4172 = vmatprep.mubr.msk.f32.mxu1 %vm292_vm0, %v5992_v47 }
  0xd4   :  { %4560 = vmatmul.mubr.msk.f32.gmra.mrb[50].mxu0 %vm292_vm0, %v79_v49 }
  0xd5   :  { %4562 = vmatprep.mubr.msk.f32.mxu0 %vm292_vm0, %v80_v50  ;;  %v125_v50 = vld [vmem:[%s6751_s0 + $0x308] sm:$0xff] }
  0xd8   :  { %4563 = vmatmul.mubr.msk.f32.gmra.mrb[52].mxu0 %vm292_vm0, %v81_v51  ;;  %v126_v51 = vld [vmem:[%s6751_s0 + $0x310] sm:$0xff] }
  0xd9   :  { %4565 = vmatprep.mubr.msk.f32.mxu0 %vm292_vm0, %v82_v53 }
  0xdc   :  { %4566 = vmatmul.mubr.msk.f32.gmra.mrb[54].mxu0 %vm292_vm0, %v83_v55  ;;  %v128_v55 = vld [vmem:[%s6751_s0 + $0x320] sm:$0xff] }
  0xdd   :  { %4568 = vmatprep.mubr.msk.f32.mxu0 %vm292_vm0, %v84_v56 }
  0xe0   :  { %4569 = vmatmul.mubr.msk.f32.gmra.mrb[56].mxu0 %vm292_vm0, %v85_v57 }
  0xe1   :  { %4571 = vmatprep.mubr.msk.f32.mxu0 %vm292_vm0, %v86_v59  ;;  %v130_v59 = vld [vmem:[%s6751_s0 + $0x330] sm:$0xff] }
  0xe4   :  { %4572 = vmatmul.mubr.msk.f32.gmra.mrb[58].mxu0 %vm292_vm0, %v87_v61 }
  0xe5   :  { %4574 = vmatprep.mubr.msk.f32.mxu0 %vm292_vm0, %v88_v62  ;;  %v131_v62 = vld [vmem:[%s6751_s0 + $0x338] sm:$0xff] }
  0xe6   :  { %v5977_v43 = vpop.f32.mrb[0].mxu1 }
  0xe7   :  { %v5979_v44 = vpop.f32.mrb[1].mxu1 }
  0xe8   :  { %4575 = vmatmul.mubr.msk.f32.gmra.mrb[60].mxu0 %vm292_vm0, %v89_v63  ;;  %v132_v63 = vld [vmem:[%s6751_s0 + $0x340] sm:$0xff] }
  0xe9   :  { %4577 = vmatprep.mubr.msk.f32.mxu0 %vm292_vm0, %v90_v1 }
  0xea   :  { %v5994_v48 = vpop.f32.mrb[2].mxu1 }
  0xeb   :  { %v5998_v49 = vpop.f32.mrb[3].mxu1 }
  0xec   :  { %4578 = vmatmul.mubr.msk.f32.gmra.mrb[62].mxu0 %vm292_vm0, %v91_v3  ;;  %v134_v3 = vld [vmem:[%s6751_s0 + $0x350] sm:$0xff] }
  0xed   :  { %4580 = vmatprep.mubr.msk.f32.mxu0 %vm292_vm0, %v92_v4 }
  0xee   :  { %v6008_v52 = vpop.f32.mrb[4].mxu1 }
  0xef   :  { %v6010_v53 = vpop.f32.mrb[5].mxu1 }
  0xf0   :  { %4581 = vmatmul.mubr.msk.f32.gmra.mrb[64].mxu0 %vm292_vm0, %v93_v5 }
  0xf1   :  { %4583 = vmatprep.mubr.msk.f32.mxu0 %vm292_vm0, %v94_v7  ;;  %v135_v7 = vld [vmem:[%s6751_s0 + $0x358] sm:$0xff] }
  0xf2   :  { %v6020_v56 = vpop.f32.mrb[6].mxu1 }
  0xf3   :  { %v6022_v57 = vpop.f32.mrb[7].mxu1 }
  0xf4   :  { %4584 = vmatmul.mubr.msk.f32.gmra.mrb[66].mxu0 %vm292_vm0, %v95_v9 }
  0xf5   :  { %4586 = vmatprep.mubr.msk.f32.mxu0 %vm292_vm0, %v96_v10 }
  0xf6   :  { %v6032_v60 = vpop.f32.mrb[8].mxu1 }
  0xf7   :  { %v6034_v61 = vpop.f32.mrb[9].mxu1 }
  0xf8   :  { %4587 = vmatmul.mubr.msk.f32.gmra.mrb[68].mxu0 %vm292_vm0, %v97_v11 }
  0xf9   :  { %4589 = vmatprep.mubr.msk.f32.mxu0 %vm292_vm0, %v98_v13 }
  0xfa   :  { %v6044_v0 = vpop.f32.mrb[10].mxu1 }
  0xfb   :  { %v6046_v1 = vpop.f32.mrb[11].mxu1 }
  0xfc   :  { %4590 = vmatmul.mubr.msk.f32.gmra.mrb[70].mxu0 %vm292_vm0, %v99_v15  ;;  %v137_v15 = vld [vmem:[%s6751_s0 + $0x368] sm:$0xff] }
  0xfd   :  { %4592 = vmatprep.mubr.msk.f32.mxu0 %vm292_vm0, %v100_v16 }
  0xfe   :  { %v6056_v4 = vpop.f32.mrb[12].mxu1 }
  0xff   :  { %v6058_v5 = vpop.f32.mrb[13].mxu1 }
 0x100   :  { %4593 = vmatmul.mubr.msk.f32.gmra.mrb[72].mxu0 %vm292_vm0, %v101_v17  ;;  %v138_v17 = vld [vmem:[%s6751_s0 + $0x370] sm:$0xff] }
 0x101   :  { %4595 = vmatprep.mubr.msk.f32.mxu0 %vm292_vm0, %v102_v19 }
 0x102   :  { %v6073_v9 = vpop.f32.mrb[14].mxu1 }
 0x103   :  { %v6075_v11 = vpop.f32.mrb[15].mxu1 }
 0x104   :  { %4596 = vmatmul.mubr.msk.f32.gmra.mrb[74].mxu0 %vm292_vm0, %v103_v21 }
 0x105   :  { %4598 = vmatprep.mubr.msk.f32.mxu0 %vm292_vm0, %v104_v22 }
 0x106   :  { %v6087_v18 = vpop.f32.mrb[16].mxu1 }
 0x107   :  { %v6089_v21 = vpop.f32.mrb[17].mxu1 }
 0x108   :  { %4599 = vmatmul.mubr.msk.f32.gmra.mrb[76].mxu0 %vm292_vm0, %v105_v23 }
 0x109   :  { %4601 = vmatprep.mubr.msk.f32.mxu0 %vm292_vm0, %v106_v25 }
 0x10c   :  { %4602 = vmatmul.mubr.msk.f32.gmra.mrb[78].mxu0 %vm292_vm0, %v107_v27 }
 0x10d   :  { %4604 = vmatprep.mubr.msk.f32.mxu0 %vm292_vm0, %v108_v28  ;;  %v140_v28 = vld [vmem:[%s6751_s0 + $0x380] sm:$0xff] }
 0x110   :  { %4605 = vmatmul.mubr.msk.f32.gmra.mrb[80].mxu0 %vm292_vm0, %v109_v29  ;;  %v6103_v29 = vpop.f32.mrb[18].mxu1 }
 0x111   :  { %4607 = vmatprep.mubr.msk.f32.mxu0 %vm292_vm0, %v110_v30 }
 0x114   :  { %4608 = vmatmul.mubr.msk.f32.gmra.mrb[82].mxu0 %vm292_vm0, %v111_v31 }
 0x115   :  { %4610 = vmatprep.mubr.msk.f32.mxu0 %vm292_vm0, %v112_v32  ;;  %v6105_v32 = vpop.f32.mrb[19].mxu1 }
 0x118   :  { %4611 = vmatmul.mubr.msk.f32.gmra.mrb[84].mxu0 %vm292_vm0, %v113_v33 }
 0x119   :  { %4613 = vmatprep.mubr.msk.f32.mxu0 %vm292_vm0, %v114_v34 }
 0x11c   :  { %4614 = vmatmul.mubr.msk.f32.gmra.mrb[86].mxu0 %vm292_vm0, %v115_v35 }
 0x11d   :  { %4616 = vmatprep.mubr.msk.f32.mxu0 %vm292_vm0, %v116_v36 }
 0x120   :  { %4617 = vmatmul.mubr.msk.f32.gmra.mrb[88].mxu0 %vm292_vm0, %v117_v37  ;;  %v141_v37 = vld [vmem:[%s6751_s0 + $0x388] sm:$0xff] }
 0x121   :  { %4619 = vmatprep.mubr.msk.f32.mxu0 %vm292_vm0, %v118_v38 }
 0x124   :  { %4620 = vmatmul.mubr.msk.f32.gmra.mrb[90].mxu0 %vm292_vm0, %v119_v39  ;;  %v142_v39 = vld [vmem:[%s6751_s0 + $0x390] sm:$0xff] }
 0x125   :  { %4622 = vmatprep.mubr.msk.f32.mxu0 %vm292_vm0, %v120_v40  ;;  %v6119_v40 = vpop.f32.mrb[20].mxu1 }
 0x128   :  { %4623 = vmatmul.mubr.msk.f32.gmra.mrb[92].mxu0 %vm292_vm0, %v121_v41 }
 0x129   :  { %4625 = vmatprep.mubr.msk.f32.mxu0 %vm292_vm0, %v122_v42 }
 0x12c   :  { %4626 = vmatmul.mubr.msk.f32.gmra.mrb[94].mxu0 %vm292_vm0, %v123_v45  ;;  %v6121_v45 = vpop.f32.mrb[21].mxu1 }
 0x12d   :  { %4628 = vmatprep.mubr.msk.f32.mxu0 %vm292_vm0, %v124_v46 }
 0x130   :  { %4629 = vmatmul.mubr.msk.f32.gmra.mrb[96].mxu0 %vm292_vm0, %v125_v50 }
 0x131   :  { %4631 = vmatprep.mubr.msk.f32.mxu0 %vm292_vm0, %v126_v51 }
 0x134   :  { %4632 = vmatmul.mubr.msk.f32.gmra.mrb[98].mxu0 %vm292_vm0, %v127_v54 }
 0x135   :  { %4634 = vmatprep.mubr.msk.f32.mxu0 %vm292_vm0, %v128_v55  ;;  %v143_v55 = vld [vmem:[%s6751_s0 + $0x398] sm:$0xff] }
 0x138   :  { %4635 = vmatmul.mubr.msk.f32.gmra.mrb[100].mxu0 %vm292_vm0, %v129_v58 }
 0x139   :  { %4637 = vmatprep.mubr.msk.f32.mxu0 %vm292_vm0, %v130_v59  ;;  %v144_v59 = vld [vmem:[%s6751_s0 + $0x3a0] sm:$0xff] }
 0x13c   :  { %4638 = vmatmul.mubr.msk.f32.gmra.mrb[102].mxu0 %vm292_vm0, %v131_v62  ;;  %v6135_v62 = vpop.f32.mrb[22].mxu1 }
 0x13d   :  { %4640 = vmatprep.mubr.msk.f32.mxu0 %vm292_vm0, %v132_v63 }
 0x140   :  { %4641 = vmatmul.mubr.msk.f32.gmra.mrb[104].mxu0 %vm292_vm0, %v133_v2 }
 0x141   :  { %4643 = vmatprep.mubr.msk.f32.mxu0 %vm292_vm0, %v134_v3  ;;  %v6137_v3 = vpop.f32.mrb[23].mxu1 }
 0x143   :  { %v4486_v10 = vpop.f32.mrb[0].mxu0 }
 0x144   :  { %v2479_v12 = vadd.f32 %v4486_v10, %v6064_v6  ;;  %v1832_v13 = vpop.f32.mrb[1].mxu0  ;;  %4644 = vmatmul.mubr.msk.f32.gmra.mrb[106].mxu0 %vm292_vm0, %v135_v7 }
 0x145   :  { %v2478_v14 = vadd.f32 %v6064_v6, %v1832_v13  ;;  %4646 = vmatprep.mubr.msk.f32.mxu0 %vm292_vm0, %v136_v8  ;;  %v145_v13 = vld [vmem:[%s6751_s0 + $0x3a8] sm:$0xff] }
 0x146   :  { %v2607_v16 = vmax.f32 %v2479_v12, 0.0 }
 0x147   :  { %v2606_v19 = vmax.f32 %v2478_v14, 0.0  ;;  %v4489_v20 = vpop.f32.mrb[2].mxu0 }
 0x148   :  { %v2481_v22 = vadd.f32 %v4489_v20, %v6064_v6  ;;  %v1842_v23 = vpop.f32.mrb[3].mxu0  ;;  %4647 = vmatmul.mubr.msk.f32.gmra.mrb[108].mxu0 %vm292_vm0, %v137_v15  ;;  %v146_v15 = vld [vmem:[%s6751_s0 + $0x3b0] sm:$0xff] }
 0x149   :  { %v6093_v24 = vpack.c.bf16 %v2607_v16, %v2606_v19  ;;  %v2480_v25 = vadd.f32 %v6064_v6, %v1842_v23  ;;  %4649 = vmatprep.mubr.msk.f32.mxu0 %vm292_vm0, %v138_v17  ;;  %v6151_v16 = vpop.f32.mrb[24].mxu1 }
 0x14a   :  { %v2609_v27 = vmax.f32 %v2481_v22, 0.0  ;;  %v6153_v20 = vpop.f32.mrb[25].mxu1 }
 0x14b   :  { %v2608_v30 = vmax.f32 %v2480_v25, 0.0  ;;  %v4492_v31 = vpop.f32.mrb[4].mxu0 }
 0x14c   :  { %v2483_v33 = vadd.f32 %v4492_v31, %v6064_v6  ;;  %v1852_v34 = vpop.f32.mrb[5].mxu0  ;;  %4650 = vmatmul.mubr.msk.f32.gmra.mrb[110].mxu0 %vm292_vm0, %v139_v26  ;;  %v6167_v31 = vpop.f32.mrb[26].mxu1 }
 0x14d   :  { %v6109_v35 = vpack.c.bf16 %v2609_v27, %v2608_v30  ;;  %v2482_v36 = vadd.f32 %v6064_v6, %v1852_v34  ;;  %4652 = vmatprep.mubr.msk.f32.mxu0 %vm292_vm0, %v140_v28  ;;  %v147_v27 = vld [vmem:[%s6751_s0 + $0x3b8] sm:$0xff]  ;;  %v148_v30 = vld [vmem:[%s6751_s0 + $0x3c0] sm:$0xff] }
 0x14e   :  { %v2611_v38 = vmax.f32 %v2483_v33, 0.0 }
 0x14f   :  { %v2610_v41 = vmax.f32 %v2482_v36, 0.0  ;;  %v4495_v42 = vpop.f32.mrb[6].mxu0  ;;  %v6169_v36 = vpop.f32.mrb[27].mxu1 }
 0x150   :  { %v2485_v46 = vadd.f32 %v4495_v42, %v6064_v6  ;;  %v1862_v50 = vpop.f32.mrb[7].mxu0  ;;  %4653 = vmatmul.mubr.msk.f32.gmra.mrb[112].mxu0 %vm292_vm0, %v141_v37  ;;  %v149_v42 = vld [vmem:[%s6751_s0 + $0x3c8] sm:$0xff] }
 0x151   :  { %v6125_v51 = vpack.c.bf16 %v2611_v38, %v2610_v41  ;;  %v2484_v54 = vadd.f32 %v6064_v6, %v1862_v50  ;;  %4655 = vmatprep.mubr.msk.f32.mxu0 %vm292_vm0, %v142_v39  ;;  %v150_v50 = vld [vmem:[%s6751_s0 + $0x3d0] sm:$0xff] }
 0x152   :  { %v2613_v58 = vmax.f32 %v2485_v46, 0.0 }
 0x153   :  { %v2612_v63 = vmax.f32 %v2484_v54, 0.0  ;;  %v4498_v2 = vpop.f32.mrb[8].mxu0  ;;  %v6183_v54 = vpop.f32.mrb[28].mxu1 }
 0x154   :  { %v2487_v7 = vadd.f32 %v4498_v2, %v6064_v6  ;;  %v1872_v8 = vpop.f32.mrb[9].mxu0  ;;  %4656 = vmatmul.mubr.msk.f32.gmra.mrb[114].mxu0 %vm292_vm0, %v143_v55 }
 0x155   :  { %v6141_v10 = vpack.c.bf16 %v2613_v58, %v2612_v63  ;;  %v2486_v12 = vadd.f32 %v6064_v6, %v1872_v8  ;;  %4658 = vmatprep.mubr.msk.f32.mxu0 %vm292_vm0, %v144_v59  ;;  %v6185_v59 = vpop.f32.mrb[29].mxu1 }
 0x156   :  { %v2615_v14 = vmax.f32 %v2487_v7, 0.0 }
 0x157   :  { %v2614_v17 = vmax.f32 %v2486_v12, 0.0  ;;  %v4501_v19 = vpop.f32.mrb[10].mxu0  ;;  %v151_v12 = vld [vmem:[%s6751_s0 + $0x3d8] sm:$0xff] }
 0x158   :  { %v2489_v22 = vadd.f32 %v4501_v19, %v6064_v6  ;;  %v1882_v23 = vpop.f32.mrb[11].mxu0  ;;  %4659 = vmatmul.mubr.msk.f32.gmra.mrb[116].mxu0 %vm292_vm0, %v145_v13 }
 0x159   :  { %v6157_v25 = vpack.c.bf16 %v2615_v14, %v2614_v17  ;;  %v2488_v26 = vadd.f32 %v6064_v6, %v1882_v23  ;;  %4661 = vmatprep.mubr.msk.f32.mxu0 %vm292_vm0, %v146_v15  ;;  %v152_v14 = vld [vmem:[%s6751_s0 + $0x3e0] sm:$0xff]  ;;  %v6199_v15 = vpop.f32.mrb[30].mxu1 }
 0x15a   :  { %v2617_v28 = vmax.f32 %v2489_v22, 0.0  ;;  %v6201_v22 = vpop.f32.mrb[31].mxu1 }
 0x15b   :  { %v2616_v33 = vmax.f32 %v2488_v26, 0.0  ;;  %v4504_v34 = vpop.f32.mrb[12].mxu0 }
 0x15c   :  { %v2491_v37 = vadd.f32 %v4504_v34, %v6064_v6  ;;  %v1892_v38 = vpop.f32.mrb[13].mxu0  ;;  %4662 = vmatmul.mubr.msk.f32.gmra.mrb[118].mxu0 %vm292_vm0, %v147_v27  ;;  %v154_v34 = vld [vmem:[%s6751_s0 + $0x3f0] sm:$0xff] }
 0x15d   :  { %v6173_v39 = vpack.c.bf16 %v2617_v28, %v2616_v33  ;;  %v2490_v41 = vadd.f32 %v6064_v6, %v1892_v38  ;;  %4664 = vmatprep.mubr.msk.f32.mxu0 %vm292_vm0, %v148_v30  ;;  %v153_v30 = vld [vmem:[%s6751_s0 + $0x3e8] sm:$0xff] }
 0x15e   :  { %v2619_v46 = vmax.f32 %v2491_v37, 0.0  ;;  %v6215_v37 = vpop.f32.mrb[32].mxu1 }
 0x15f   :  { %v2618_v55 = vmax.f32 %v2490_v41, 0.0  ;;  %v4507_v58 = vpop.f32.mrb[14].mxu0 }
 0x160   :  { %v2493_v63 = vadd.f32 %v4507_v58, %v6064_v6  ;;  %v1902_v2 = vpop.f32.mrb[15].mxu0  ;;  %4665 = vmatmul.mubr.msk.f32.gmra.mrb[120].mxu0 %vm292_vm0, %v149_v42  ;;  %v6217_v42 = vpop.f32.mrb[33].mxu1 }
 0x161   :  { %v6189_v7 = vpack.c.bf16 %v2619_v46, %v2618_v55  ;;  %v2492_v8 = vadd.f32 %v6064_v6, %v1902_v2  ;;  %4667 = vmatprep.mubr.msk.f32.mxu0 %vm292_vm0, %v150_v50  ;;  %v155_v2 = vld [vmem:[%s6751_s0 + $0x3f8] sm:$0xff] }
 0x162   :  { %v2621_v13 = vmax.f32 %v2493_v63, 0.0 }
 0x163   :  { %v2620_v17 = vmax.f32 %v2492_v8, 0.0  ;;  %v4510_v19 = vpop.f32.mrb[16].mxu0 }
 0x164   :  { %v2495_v23 = vadd.f32 %v4510_v19, %v6064_v6  ;;  %v1912_v26 = vpop.f32.mrb[17].mxu0  ;;  %4668 = vmatmul.mubr.msk.f32.gmra.mrb[122].mxu0 %vm292_vm0, %v151_v12  ;;  %v6232_v12 = vpop.f32.mrb[34].mxu1 }
 0x165   :  { %v6205_v27 = vpack.c.bf16 %v2621_v13, %v2620_v17  ;;  %v2494_v28 = vadd.f32 %v6064_v6, %v1912_v26  ;;  %4670 = vmatprep.mubr.msk.f32.mxu0 %vm292_vm0, %v152_v14  ;;  %v6236_v17 = vpop.f32.mrb[35].mxu1 }
 0x166   :  { %v2623_v33 = vmax.f32 %v2495_v23, 0.0 }
 0x167   :  { %v2622_v38 = vmax.f32 %v2494_v28, 0.0  ;;  %v4513_v41 = vpop.f32.mrb[18].mxu0 }
 0x168   :  { %v2497_v46 = vadd.f32 %v4513_v41, %v6064_v6  ;;  %v1922_v50 = vpop.f32.mrb[19].mxu0  ;;  %4671 = vmatmul.mubr.msk.f32.gmra.mrb[124].mxu0 %vm292_vm0, %v153_v30 }
 0x169   :  { %v4692_v58 = vpack.c.bf16 %v2623_v33, %v2622_v38  ;;  %v2496_v63 = vadd.f32 %v6064_v6, %v1922_v50  ;;  %4673 = vmatprep.mubr.msk.f32.mxu0 %vm292_vm0, %v154_v34  ;;  %v6244_v33 = vpop.f32.mrb[36].mxu1 }
 0x16a   :  { %v2625_v8 = vmax.f32 %v2497_v46, 0.0  ;;  %v6248_v41 = vpop.f32.mrb[37].mxu1 }
 0x16b   :  { %v2624_v13 = vmax.f32 %v2496_v63, 0.0  ;;  %v4516_v14 = vpop.f32.mrb[20].mxu0  ;;  %4694 = vmatprep.subr.msk.bf16.mxu1 %vm6222_vm1, %v4692_v58  ;;  %6758 = vst [vmem:[#allocation3_spill] sm:$0xff] %v6248_v41 }
 0x16c   :  { %v2499_v19 = vadd.f32 %v4516_v14, %v6064_v6  ;;  %v1932_v23 = vpop.f32.mrb[21].mxu0  ;;  %4697 = vmatpush3.bf16.xpose.msk.msra.mxu1 %vm6222_vm1, %v6093_v24  ;;  %4674 = vmatmul.mubr.msk.f32.gmra.mrb[126].mxu0 %vm292_vm0, %v155_v2  ;;  %v6252_v2 = vpop.f32.mrb[38].mxu1 }
 0x16d   :  { %v4698_v26 = vpack.c.bf16 %v2625_v8, %v2624_v13  ;;  %v2498_v28 = vadd.f32 %v6064_v6, %v1932_v23  ;;  %6759 = vst [vmem:[#allocation4_spill] sm:$0xff] %v6252_v2  ;;  %v6254_v14 = vpop.f32.mrb[39].mxu1 }
 0x16e   :  { %v2627_v30 = vmax.f32 %v2499_v19, 0.0  ;;  %6760 = vst [vmem:[#allocation5_spill] sm:$0xff] %v6254_v14 }
 0x16f   :  { %v2626_v34 = vmax.f32 %v2498_v28, 0.0  ;;  %v4519_v38 = vpop.f32.mrb[22].mxu0  ;;  %4700 = vmatprep.subr.msk.bf16.mxu1 %vm6222_vm1, %v4698_v26 }
 0x170   :  { %v2501_v46 = vadd.f32 %v4519_v38, %v6064_v6  ;;  %v1942_v50 = vpop.f32.mrb[23].mxu0 }
 0x171   :  { %v4704_v58 = vpack.c.bf16 %v2627_v30, %v2626_v34  ;;  %v2500_v24 = vadd.f32 %v6064_v6, %v1942_v50  ;;  %v6263_v34 = vpop.f32.mrb[40].mxu1 }
 0x172   :  { %v2629_v63 = vmax.f32 %v2501_v46, 0.0  ;;  %6761 = vst [vmem:[#allocation6_spill] sm:$0xff] %v6263_v34  ;;  %v6265_v50 = vpop.f32.mrb[41].mxu1 }
 0x173   :  { %v2628_v8 = vmax.f32 %v2500_v24, 0.0  ;;  %v4522_v13 = vpop.f32.mrb[24].mxu0  ;;  %6762 = vst [vmem:[#allocation7_spill] sm:$0xff] %v6265_v50  ;;  %v12_v24 = vstv %s6754_s6 }
 0x174   :  { %v2503_v19 = vadd.f32 %v4522_v13, %v6064_v6  ;;  %v1952_v23 = vpop.f32.mrb[25].mxu0  ;;  %4703 = vmatpush3.bf16.xpose.msk.msra.mxu1 %vm6222_vm1, %v6109_v35  ;;  %13 = vst [vmem:[#allocation2] sm:$0x1] %v12_v24 }
 0x175   :  { %v4710_v26 = vpack.c.bf16 %v2629_v63, %v2628_v8  ;;  %v2502_v28 = vadd.f32 %v6064_v6, %v1952_v23  ;;  %4706 = vmatprep.subr.msk.bf16.mxu1 %vm6222_vm1, %v4704_v58  ;;  %v6272_v58 = vpop.f32.mrb[42].mxu1 }
 0x176   :  { %v2631_v30 = vmax.f32 %v2503_v19, 0.0  ;;  %6763 = vst [vmem:[#allocation8_spill] sm:$0xff] %v6272_v58 }
 0x177   :  { %v2630_v38 = vmax.f32 %v2502_v28, 0.0  ;;  %v4525_v46 = vpop.f32.mrb[26].mxu0  ;;  %v6274_v28 = vpop.f32.mrb[43].mxu1 }
 0x178   :  { %v2505_v13 = vadd.f32 %v4525_v46, %v6064_v6  ;;  %v1962_v35 = vpop.f32.mrb[27].mxu0  ;;  %6764 = vst [vmem:[#allocation9_spill] sm:$0xff] %v6274_v28  ;;  %v5021_v28 = vmov 0  }
 0x179   :  { %v4716_v63 = vpack.c.bf16 %v2631_v30, %v2630_v38  ;;  %v2504_v8 = vadd.f32 %v6064_v6, %v1962_v35  ;;  %v6283_v38 = vpop.f32.mrb[44].mxu1  ;;  %5018 = vset.pattern.permute.xlu0 %v5021_v28 }
 0x17a   :  { %v2633_v23 = vmax.f32 %v2505_v13, 0.0  ;;  %6765 = vst [vmem:[#allocation10_spill] sm:$0xff] %v6283_v38 }
 0x17b   :  { %v2632_v19 = vmax.f32 %v2504_v8, 0.0  ;;  %v4528_v34 = vpop.f32.mrb[28].mxu0  ;;  %v6285_v8 = vpop.f32.mrb[45].mxu1 }
 0x17c   :  { %v2507_v50 = vadd.f32 %v4528_v34, %v6064_v6  ;;  %v1972_v14 = vpop.f32.mrb[29].mxu0  ;;  %4709 = vmatpush3.bf16.xpose.msk.msra.mxu1 %vm6222_vm1, %v6125_v51  ;;  %6766 = vst [vmem:[#allocation11_spill] sm:$0xff] %v6285_v8  ;;  %v3406_v34 = vld [vmem:[#allocation2] sm:$0x1] }
 0x17d   :  { %v4722_v46 = vpack.c.bf16 %v2633_v23, %v2632_v19  ;;  %v2506_v24 = vadd.f32 %v6064_v6, %v1972_v14  ;;  %4712 = vmatprep.subr.msk.bf16.mxu1 %vm6222_vm1, %v4710_v26  ;;  %3409 = vperm.xlu0 %5018, %v3406_v34   ;;  %v6289_v19 = vpop.f32.mrb[46].mxu1 }
 0x17e   :  { %v2635_v30 = vmax.f32 %v2507_v50, 0.0  ;;  %6767 = vst [vmem:[#allocation12_spill] sm:$0xff] %v6289_v19  ;;  %v6291_v38 = vpop.f32.mrb[47].mxu1 }
 0x17f   :  { %v2634_v13 = vmax.f32 %v2506_v24, 0.0  ;;  %v4531_v35 = vpop.f32.mrb[30].mxu0  ;;  %6768 = vst [vmem:[#allocation13_spill] sm:$0xff] %v6291_v38 }
 0x180   :  { %v2509_v58 = vadd.f32 %v4531_v35, %v6064_v6  ;;  %v1982_v2 = vpop.f32.mrb[31].mxu0 }
 0x181   :  { %v4728_v51 = vpack.c.bf16 %v2635_v30, %v2634_v13  ;;  %v2508_v14 = vadd.f32 %v6064_v6, %v1982_v2 }
 0x182   :  { %v2637_v23 = vmax.f32 %v2509_v58, 0.0  ;;  %v6300_v58 = vpop.f32.mrb[48].mxu1 }
 0x183   :  { %v2636_v26 = vmax.f32 %v2508_v14, 0.0  ;;  %v4534_v50 = vpop.f32.mrb[32].mxu0  ;;  %6769 = vst [vmem:[#allocation14_spill] sm:$0xff] %v6300_v58  ;;  %v6302_v34 = vpop.f32.mrb[49].mxu1 }
 0x184   :  { %v2511_v24 = vadd.f32 %v4534_v50, %v6064_v6  ;;  %v1992_v8 = vpop.f32.mrb[33].mxu0  ;;  %4715 = vmatpush3.bf16.xpose.msk.msra.mxu1 %vm6222_vm1, %v6141_v10  ;;  %6770 = vst [vmem:[#allocation15_spill] sm:$0xff] %v6302_v34 }
 0x185   :  { %v4734_v28 = vpack.c.bf16 %v2637_v23, %v2636_v26  ;;  %v2510_v35 = vadd.f32 %v6064_v6, %v1992_v8  ;;  %4718 = vmatprep.subr.msk.bf16.mxu1 %vm6222_vm1, %v4716_v63  ;;  %v6308_v26 = vpop.f32.mrb[50].mxu1 }
 0x186   :  { %v2639_v2 = vmax.f32 %v2511_v24, 0.0  ;;  %6771 = vst [vmem:[#allocation16_spill] sm:$0xff] %v6308_v26  ;;  %v6310_v63 = vpop.f32.mrb[51].mxu1 }
 0x187   :  { %v2638_v30 = vmax.f32 %v2510_v35, 0.0  ;;  %v4537_v13 = vpop.f32.mrb[34].mxu0  ;;  %6772 = vst [vmem:[#allocation17_spill] sm:$0xff] %v6310_v63 }
 0x188   :  { %v2513_v14 = vadd.f32 %v4537_v13, %v6064_v6  ;;  %v2002_v50 = vpop.f32.mrb[35].mxu0 }
 0x189   :  { %v6305_v38 = vpack.c.bf16 %v2639_v2, %v2638_v30  ;;  %v2512_v10 = vadd.f32 %v6064_v6, %v2002_v50 }
 0x18a   :  { %v2641_v23 = vmax.f32 %v2513_v14, 0.0  ;;  %v6321_v14 = vpop.f32.mrb[52].mxu1 }
 0x18b   :  { %v2640_v8 = vmax.f32 %v2512_v10, 0.0  ;;  %v4540_v19 = vpop.f32.mrb[36].mxu0  ;;  %6773 = vst [vmem:[#allocation18_spill] sm:$0xff] %v6321_v14  ;;  %v6323_v63 = vpop.f32.mrb[53].mxu1 }
 0x18c   :  { %v2515_v24 = vadd.f32 %v4540_v19, %v6064_v6  ;;  %v2012_v35 = vpop.f32.mrb[37].mxu0  ;;  %4721 = vmatpush3.bf16.xpose.msk.msra.mxu1 %vm6222_vm1, %v6157_v25  ;;  %6774 = vst [vmem:[#allocation19_spill] sm:$0xff] %v6323_v63 }
 0x18d   :  { %v6316_v13 = vpack.c.bf16 %v2641_v23, %v2640_v8  ;;  %v2514_v2 = vadd.f32 %v6064_v6, %v2012_v35  ;;  %4724 = vmatprep.subr.msk.bf16.mxu1 %vm6222_vm1, %v4722_v46  ;;  %v6329_v8 = vpop.f32.mrb[54].mxu1 }
 0x18e   :  { %v2643_v30 = vmax.f32 %v2515_v24, 0.0  ;;  %6775 = vst [vmem:[#allocation20_spill] sm:$0xff] %v6329_v8  ;;  %v6331_v46 = vpop.f32.mrb[55].mxu1 }
 0x18f   :  { %v2642_v50 = vmax.f32 %v2514_v2, 0.0  ;;  %v4543_v10 = vpop.f32.mrb[38].mxu0  ;;  %6776 = vst [vmem:[#allocation21_spill] sm:$0xff] %v6331_v46 }
 0x190   :  { %v2517_v19 = vadd.f32 %v4543_v10, %v6064_v6  ;;  %v2022_v26 = vpop.f32.mrb[39].mxu0 }
 0x191   :  { %v6326_v34 = vpack.c.bf16 %v2643_v30, %v2642_v50  ;;  %v2516_v25 = vadd.f32 %v6064_v6, %v2022_v26  ;;  %v6342_v50 = vpop.f32.mrb[56].mxu1 }
 0x192   :  { %v2645_v23 = vmax.f32 %v2517_v19, 0.0  ;;  %6777 = vst [vmem:[#allocation22_spill] sm:$0xff] %v6342_v50  ;;  %v6344_v46 = vpop.f32.mrb[57].mxu1 }
 0x193   :  { %v2644_v35 = vmax.f32 %v2516_v25, 0.0  ;;  %v4546_v58 = vpop.f32.mrb[40].mxu0  ;;  %6778 = vst [vmem:[#allocation23_spill] sm:$0xff] %v6344_v46 }
 0x194   :  { %v2519_v24 = vadd.f32 %v4546_v58, %v6064_v6  ;;  %v2032_v2 = vpop.f32.mrb[41].mxu0  ;;  %4727 = vmatpush3.bf16.xpose.msk.msra.mxu1 %vm6222_vm1, %v6173_v39 }
 0x195   :  { %v6337_v10 = vpack.c.bf16 %v2645_v23, %v2644_v35  ;;  %v2518_v30 = vadd.f32 %v6064_v6, %v2032_v2  ;;  %4730 = vmatprep.subr.msk.bf16.mxu1 %vm6222_vm1, %v4728_v51  ;;  %v6350_v35 = vpop.f32.mrb[58].mxu1 }
 0x196   :  { %v2647_v26 = vmax.f32 %v2519_v24, 0.0  ;;  %6779 = vst [vmem:[#allocation24_spill] sm:$0xff] %v6350_v35  ;;  %v6352_v51 = vpop.f32.mrb[59].mxu1 }
 0x197   :  { %v2646_v19 = vmax.f32 %v2518_v30, 0.0  ;;  %v4549_v25 = vpop.f32.mrb[42].mxu0  ;;  %6780 = vst [vmem:[#allocation25_spill] sm:$0xff] %v6352_v51 }
 0x198   :  { %v2521_v58 = vadd.f32 %v4549_v25, %v6064_v6  ;;  %v2042_v8 = vpop.f32.mrb[43].mxu0 }
 0x199   :  { %v6347_v63 = vpack.c.bf16 %v2647_v26, %v2646_v19  ;;  %v2520_v39 = vadd.f32 %v6064_v6, %v2042_v8  ;;  %v6363_v19 = vpop.f32.mrb[60].mxu1 }
 0x19a   :  { %v2649_v23 = vmax.f32 %v2521_v58, 0.0  ;;  %6781 = vst [vmem:[#allocation26_spill] sm:$0xff] %v6363_v19  ;;  %v6365_v51 = vpop.f32.mrb[61].mxu1 }
 0x19b   :  { %v2648_v2 = vmax.f32 %v2520_v39, 0.0  ;;  %v4552_v14 = vpop.f32.mrb[44].mxu0  ;;  %6782 = vst [vmem:[#allocation27_spill] sm:$0xff] %v6365_v51 }
 0x19c   :  { %v2523_v24 = vadd.f32 %v4552_v14, %v6064_v6  ;;  %v2052_v30 = vpop.f32.mrb[45].mxu0  ;;  %4733 = vmatpush3.bf16.xpose.msk.msra.mxu1 %vm6222_vm1, %v6189_v7 }
 0x19d   :  { %v6358_v25 = vpack.c.bf16 %v2649_v23, %v2648_v2  ;;  %v2522_v26 = vadd.f32 %v6064_v6, %v2052_v30  ;;  %4736 = vmatprep.subr.msk.bf16.mxu1 %vm6222_vm1, %v4734_v28  ;;  %v6371_v2 = vpop.f32.mrb[62].mxu1 }
 0x19e   :  { %v2651_v8 = vmax.f32 %v2523_v24, 0.0  ;;  %6783 = vst [vmem:[#allocation28_spill] sm:$0xff] %v6371_v2  ;;  %v6373_v28 = vpop.f32.mrb[63].mxu1 }
 0x19f   :  { %v2650_v58 = vmax.f32 %v2522_v26, 0.0  ;;  %v4555_v39 = vpop.f32.mrb[46].mxu0  ;;  %6784 = vst [vmem:[#allocation29_spill] sm:$0xff] %v6373_v28  ;;  %v6385_v19 = vpop.f32.mrb[64].mxu1 }
 0x1a0   :  { %v2525_v14 = vadd.f32 %v4555_v39, %v6064_v6  ;;  %v2062_v35 = vpop.f32.mrb[47].mxu0 }
 0x1a1   :  { %v6368_v46 = vpack.c.bf16 %v2651_v8, %v2650_v58  ;;  %v2524_v7 = vadd.f32 %v6064_v6, %v2062_v35 }
 0x1a2   :  { %v2653_v23 = vmax.f32 %v2525_v14, 0.0 }
 0x1a3   :  { %v2652_v30 = vmax.f32 %v2524_v7, 0.0  ;;  %v4558_v50 = vpop.f32.mrb[48].mxu0 }
 0x1a4   :  { %v2527_v24 = vadd.f32 %v4558_v50, %v6064_v6  ;;  %v2072_v26 = vpop.f32.mrb[49].mxu0  ;;  %4739 = vmatpush3.bf16.xpose.msk.msra.mxu1 %vm6222_vm1, %v6205_v27 }
 0x1a5   :  { %v6379_v39 = vpack.c.bf16 %v2653_v23, %v2652_v30  ;;  %v2526_v8 = vadd.f32 %v6064_v6, %v2072_v26  ;;  %v6392_v23 = vpop.f32.mrb[65].mxu1 }
 0x1a6   :  { %v2655_v58 = vmax.f32 %v2527_v24, 0.0 }
 0x1a7   :  { %v2654_v35 = vmax.f32 %v2526_v8, 0.0  ;;  %v4561_v14 = vpop.f32.mrb[50].mxu0 }
 0x1a8   :  { %v2088_v2 = vadd.f32 %v4561_v14, %v5977_v43  ;;  %v2082_v7 = vpop.f32.mrb[51].mxu0 }
 0x1a9   :  { %v4740_v51 = vpack.c.bf16 %v2655_v58, %v2654_v35  ;;  %v2083_v28 = vadd.f32 %v2082_v7, %v5979_v44  ;;  %v6408_v7 = vpop.f32.mrb[66].mxu1 }
 0x1aa   :  { %v2529_v50 = vadd.f32 %v6064_v6, %v2088_v2 }
 0x1ab   :  { %v2528_v41 = vadd.f32 %v6064_v6, %v2083_v28  ;;  %4742 = vmatprep.subr.msk.bf16.mxu1 %vm6222_vm1, %v4740_v51  ;;  %4173 = vmatmul.mubr.msk.f32.vlgmr.msra.gmra.mrb[78].mxu1 %vm292_vm0, %v5992_v47  ;;  %v4564_v27 = vpop.f32.mrb[52].mxu0 }
 0x1ac   :  { %v2657_v43 = vmax.f32 %v2529_v50, 0.0  ;;  %4745 = vmatpush3.bf16.xpose.msk.msra.mxu1 %vm6222_vm1, %v6305_v38  ;;  %v2098_v44 = vadd.f32 %v4564_v27, %v5994_v48  ;;  %v2092_v2 = vpop.f32.mrb[53].mxu0  ;;  %4206 = vmatprep.mubr.msk.f32.mxu1 %vm292_vm0, %v5992_v47 }
 0x1ad   :  { %v2656_v30 = vmax.f32 %v2528_v41, 0.0  ;;  %v2093_v51 = vadd.f32 %v2092_v2, %v5998_v49 }
 0x1ae   :  { %v2531_v28 = vadd.f32 %v6064_v6, %v2098_v44 }
 0x1af   :  { %v4746_v24 = vpack.c.bf16 %v2657_v43, %v2656_v30  ;;  %v2530_v26 = vadd.f32 %v6064_v6, %v2093_v51  ;;  %v4567_v8 = vpop.f32.mrb[54].mxu0  ;;  %v6411_v43 = vpop.f32.mrb[67].mxu1 }
 0x1b0   :  { %v2659_v58 = vmax.f32 %v2531_v28, 0.0  ;;  %v2108_v35 = vadd.f32 %v4567_v8, %v6008_v52  ;;  %v2102_v14 = vpop.f32.mrb[55].mxu0 }
 0x1b1   :  { %v2658_v38 = vmax.f32 %v2530_v26, 0.0  ;;  %4748 = vmatprep.subr.msk.bf16.mxu1 %vm6222_vm1, %v4746_v24  ;;  %v2103_v48 = vadd.f32 %v2102_v14, %v6010_v53 }
 0x1b2   :  { %v2533_v41 = vadd.f32 %v6064_v6, %v2108_v35 }
 0x1b3   :  { %v4752_v49 = vpack.c.bf16 %v2659_v58, %v2658_v38  ;;  %v2532_v50 = vadd.f32 %v6064_v6, %v2103_v48  ;;  %v4570_v27 = vpop.f32.mrb[56].mxu0  ;;  %v6425_v38 = vpop.f32.mrb[68].mxu1 }
 0x1b4   :  { %4751 = vmatpush3.bf16.xpose.msk.msra.mxu1 %vm6222_vm1, %v6316_v13  ;;  %v2661_v52 = vmax.f32 %v2533_v41, 0.0  ;;  %v2118_v44 = vadd.f32 %v4570_v27, %v6020_v56  ;;  %v2112_v2 = vpop.f32.mrb[57].mxu0 }
 0x1b5   :  { %v2660_v30 = vmax.f32 %v2532_v50, 0.0  ;;  %4754 = vmatprep.subr.msk.bf16.mxu1 %vm6222_vm1, %v4752_v49  ;;  %v2113_v53 = vadd.f32 %v2112_v2, %v6022_v57  ;;  %v6428_v49 = vpop.f32.mrb[69].mxu1 }
 0x1b6   :  { %v2535_v51 = vadd.f32 %v6064_v6, %v2118_v44 }
 0x1b7   :  { %v4758_v28 = vpack.c.bf16 %v2661_v52, %v2660_v30  ;;  %v2534_v24 = vadd.f32 %v6064_v6, %v2113_v53  ;;  %v4573_v26 = vpop.f32.mrb[58].mxu0 }
 0x1b8   :  { %v2663_v8 = vmax.f32 %v2535_v51, 0.0  ;;  %v2128_v58 = vadd.f32 %v4573_v26, %v6032_v60  ;;  %v2122_v13 = vpop.f32.mrb[59].mxu0 }
 0x1b9   :  { %v2662_v35 = vmax.f32 %v2534_v24, 0.0  ;;  %v2123_v56 = vadd.f32 %v2122_v13, %v6034_v61 }
 0x1ba   :  { %v2537_v14 = vadd.f32 %v6064_v6, %v2128_v58  ;;  %v6442_v58 = vpop.f32.mrb[70].mxu1 }
 0x1bb   :  { %v4764_v48 = vpack.c.bf16 %v2663_v8, %v2662_v35  ;;  %v2536_v57 = vadd.f32 %v6064_v6, %v2123_v56  ;;  %v4576_v41 = vpop.f32.mrb[60].mxu0  ;;  %v6445_v35 = vpop.f32.mrb[71].mxu1 }
 0x1bc   :  { %4757 = vmatpush3.bf16.xpose.msk.msra.mxu1 %vm6222_vm1, %v6326_v34  ;;  %v2665_v50 = vmax.f32 %v2537_v14, 0.0  ;;  %v2138_v60 = vadd.f32 %v4576_v41, %v6044_v0  ;;  %v2132_v27 = vpop.f32.mrb[61].mxu0 }
 0x1bd   :  { %4760 = vmatprep.subr.msk.bf16.mxu1 %vm6222_vm1, %v4758_v28  ;;  %v2664_v61 = vmax.f32 %v2536_v57, 0.0  ;;  %v2133_v52 = vadd.f32 %v2132_v27, %v6046_v1 }
 0x1be   :  { %v2539_v44 = vadd.f32 %v6064_v6, %v2138_v60 }
 0x1bf   :  { %v4770_v2 = vpack.c.bf16 %v2665_v50, %v2664_v61  ;;  %v2538_v30 = vadd.f32 %v6064_v6, %v2133_v52  ;;  %v4579_v53 = vpop.f32.mrb[62].mxu0 }
 0x1c0   :  { %v2667_v51 = vmax.f32 %v2539_v44, 0.0  ;;  %v2148_v24 = vadd.f32 %v4579_v53, %v6056_v4  ;;  %v2142_v34 = vpop.f32.mrb[63].mxu0 }
 0x1c1   :  { %v2666_v26 = vmax.f32 %v2538_v30, 0.0  ;;  %v2143_v0 = vadd.f32 %v2142_v34, %v6058_v5 }
 0x1c2   :  { %v2541_v8 = vadd.f32 %v6064_v6, %v2148_v24 }
 0x1c3   :  { %v4776_v28 = vpack.c.bf16 %v2667_v51, %v2666_v26  ;;  %v2540_v1 = vadd.f32 %v6064_v6, %v2143_v0  ;;  %v4582_v13 = vpop.f32.mrb[64].mxu0 }
 0x1c4   :  { %4763 = vmatpush3.bf16.xpose.msk.msra.mxu1 %vm6222_vm1, %v6337_v10  ;;  %v2669_v56 = vmax.f32 %v2541_v8, 0.0  ;;  %v2158_v4 = vadd.f32 %v4582_v13, %v6073_v9  ;;  %v2152_v14 = vpop.f32.mrb[65].mxu0 }
 0x1c5   :  { %4766 = vmatprep.subr.msk.bf16.mxu1 %vm6222_vm1, %v4764_v48  ;;  %v2668_v5 = vmax.f32 %v2540_v1, 0.0  ;;  %v2153_v57 = vadd.f32 %v2152_v14, %v6075_v11  ;;  %v6461_v48 = vpop.f32.mrb[72].mxu1 }
 0x1c6   :  { %v2543_v41 = vadd.f32 %v6064_v6, %v2158_v4  ;;  %v6466_v24 = vpop.f32.mrb[73].mxu1 }
 0x1c7   :  { %v6455_v50 = vpack.c.bf16 %v2669_v56, %v2668_v5  ;;  %v2542_v60 = vadd.f32 %v6064_v6, %v2153_v57  ;;  %v4585_v27 = vpop.f32.mrb[66].mxu0 }
 0x1c8   :  { %v2671_v61 = vmax.f32 %v2543_v41, 0.0  ;;  %v2168_v10 = vadd.f32 %v4585_v27, %v6087_v18  ;;  %v2162_v52 = vpop.f32.mrb[67].mxu0 }
 0x1c9   :  { %v2670_v44 = vmax.f32 %v2542_v60, 0.0  ;;  %v2163_v9 = vadd.f32 %v2162_v52, %v6089_v21 }
 0x1ca   :  { %v2545_v30 = vadd.f32 %v6064_v6, %v2168_v10 }
 0x1cb   :  { %v6463_v53 = vpack.c.bf16 %v2671_v61, %v2670_v44  ;;  %v2544_v11 = vadd.f32 %v6064_v6, %v2163_v9  ;;  %v4588_v51 = vpop.f32.mrb[68].mxu0 }
 0x1cc   :  { %4769 = vmatpush3.bf16.xpose.msk.msra.mxu1 %vm6222_vm1, %v6347_v63  ;;  %v2673_v18 = vmax.f32 %v2545_v30, 0.0  ;;  %v2178_v34 = vadd.f32 %v4588_v51, %v6103_v29  ;;  %v2172_v26 = vpop.f32.mrb[69].mxu0 }
 0x1cd   :  { %4772 = vmatprep.subr.msk.bf16.mxu1 %vm6222_vm1, %v4770_v2  ;;  %v2672_v21 = vmax.f32 %v2544_v11, 0.0  ;;  %v2173_v0 = vadd.f32 %v2172_v26, %v6105_v32  ;;  %v6482_v2 = vpop.f32.mrb[74].mxu1 }
 0x1ce   :  { %v2547_v8 = vadd.f32 %v6064_v6, %v2178_v34  ;;  %v6487_v27 = vpop.f32.mrb[75].mxu1 }
 0x1cf   :  { %v6476_v1 = vpack.c.bf16 %v2673_v18, %v2672_v21  ;;  %v2546_v13 = vadd.f32 %v6064_v6, %v2173_v0  ;;  %v4591_v56 = vpop.f32.mrb[70].mxu0  ;;  %v6503_v21 = vpop.f32.mrb[76].mxu1 }
 0x1d0   :  { %v2675_v4 = vmax.f32 %v2547_v8, 0.0  ;;  %v2188_v63 = vadd.f32 %v4591_v56, %v6119_v40  ;;  %v2182_v14 = vpop.f32.mrb[71].mxu0  ;;  %v6508_v8 = vpop.f32.mrb[77].mxu1 }
 0x1d1   :  { %v2674_v5 = vmax.f32 %v2546_v13, 0.0  ;;  %v2183_v29 = vadd.f32 %v2182_v14, %v6121_v45 }
 0x1d2   :  { %v2549_v57 = vadd.f32 %v6064_v6, %v2188_v63 }
 0x1d3   :  { %v6484_v41 = vpack.c.bf16 %v2675_v4, %v2674_v5  ;;  %v2548_v32 = vadd.f32 %v6064_v6, %v2183_v29  ;;  %v4594_v60 = vpop.f32.mrb[72].mxu0 }
 0x1d4   :  { %4775 = vmatpush3.bf16.xpose.msk.msra.mxu1 %vm6222_vm1, %v6358_v25  ;;  %v2677_v40 = vmax.f32 %v2549_v57, 0.0  ;;  %v2198_v61 = vadd.f32 %v4594_v60, %v6135_v62  ;;  %v2192_v10 = vpop.f32.mrb[73].mxu0 }
 0x1d5   :  { %v2676_v45 = vmax.f32 %v2548_v32, 0.0  ;;  %4778 = vmatprep.subr.msk.bf16.mxu1 %vm6222_vm1, %v4776_v28  ;;  %v2193_v52 = vadd.f32 %v2192_v10, %v6137_v3 }
 0x1d6   :  { %v2551_v44 = vadd.f32 %v6064_v6, %v2198_v61 }
 0x1d7   :  { %v6497_v9 = vpack.c.bf16 %v2677_v40, %v2676_v45  ;;  %v2550_v30 = vadd.f32 %v6064_v6, %v2193_v52  ;;  %v4597_v11 = vpop.f32.mrb[74].mxu0 }
 0x1d8   :  { %v2679_v51 = vmax.f32 %v2551_v44, 0.0  ;;  %v2208_v25 = vadd.f32 %v4597_v11, %v6151_v16  ;;  %v2202_v18 = vpop.f32.mrb[75].mxu0 }
 0x1d9   :  { %v2678_v34 = vmax.f32 %v2550_v30, 0.0  ;;  %v2203_v62 = vadd.f32 %v2202_v18, %v6153_v20 }
 0x1da   :  { %v2553_v26 = vadd.f32 %v6064_v6, %v2208_v25 }
 0x1db   :  { %v6505_v28 = vpack.c.bf16 %v2679_v51, %v2678_v34  ;;  %v2552_v3 = vadd.f32 %v6064_v6, %v2203_v62  ;;  %v4600_v0 = vpop.f32.mrb[76].mxu0 }
 0x1dc   :  { %4781 = vmatpush3.bf16.xpose.msk.msra.mxu1 %vm6222_vm1, %v6368_v46  ;;  %v2681_v16 = vmax.f32 %v2553_v26, 0.0  ;;  %v2218_v13 = vadd.f32 %v4600_v0, %v6167_v31  ;;  %v2212_v56 = vpop.f32.mrb[77].mxu0 }
 0x1dd   :  { %v2680_v20 = vmax.f32 %v2552_v3, 0.0  ;;  %v2213_v4 = vadd.f32 %v2212_v56, %v6169_v36  ;;  %4784 = vmatprep.subr.msk.bf16.mxu1 %vm6222_vm1, %v6455_v50 }
 0x1de   :  { %v2555_v63 = vadd.f32 %v6064_v6, %v2218_v13 }
 0x1df   :  { %v6519_v14 = vpack.c.bf16 %v2681_v16, %v2680_v20  ;;  %v2554_v5 = vadd.f32 %v6064_v6, %v2213_v4  ;;  %v4603_v29 = vpop.f32.mrb[78].mxu0 }
 0x1e0   :  { %v2683_v57 = vmax.f32 %v2555_v63, 0.0  ;;  %v2228_v46 = vadd.f32 %v4603_v29, %v6183_v54  ;;  %v2222_v32 = vpop.f32.mrb[79].mxu0 }
 0x1e1   :  { %v2682_v31 = vmax.f32 %v2554_v5, 0.0  ;;  %v2223_v60 = vadd.f32 %v2222_v32, %v6185_v59 }
 0x1e2   :  { %v2557_v36 = vadd.f32 %v6064_v6, %v2228_v46  ;;  %v6785_v46 = vld [vmem:[#allocation3_spill] sm:$0xff] }
 0x1e3   :  { %v6525_v40 = vpack.c.bf16 %v2683_v57, %v2682_v31  ;;  %v2556_v50 = vadd.f32 %v6064_v6, %v2223_v60  ;;  %v4606_v61 = vpop.f32.mrb[80].mxu0 }
 0x1e4   :  { %v2685_v10 = vmax.f32 %v2557_v36, 0.0  ;;  %v2238_v45 = vadd.f32 %v4606_v61, %v6199_v15  ;;  %v2232_v52 = vpop.f32.mrb[81].mxu0  ;;  %4787 = vmatpush3.bf16.xpose.msk.msra.mxu1 %vm6222_vm1, %v6379_v39 }
 0x1e5   :  { %v2684_v54 = vmax.f32 %v2556_v50, 0.0  ;;  %v2233_v44 = vadd.f32 %v2232_v52, %v6201_v22  ;;  %v6786_v50 = vld [vmem:[#allocation4_spill] sm:$0xff]  ;;  %v6787_v52 = vld [vmem:[#allocation5_spill] sm:$0xff] }
 0x1e6   :  { %v2559_v59 = vadd.f32 %v6064_v6, %v2238_v45 }
 0x1e7   :  { %v6534_v30 = vpack.c.bf16 %v2685_v10, %v2684_v54  ;;  %v2558_v11 = vadd.f32 %v6064_v6, %v2233_v44  ;;  %v4609_v51 = vpop.f32.mrb[82].mxu0 }
 0x1e8   :  { %v2687_v25 = vmax.f32 %v2559_v59, 0.0  ;;  %v2248_v18 = vadd.f32 %v4609_v51, %v6215_v37  ;;  %v2242_v34 = vpop.f32.mrb[83].mxu0  ;;  %v6547_v37 = vld [vmem:[%s6752_s5] sm:$0xff] }
 0x1e9   :  { %v2686_v15 = vmax.f32 %v2558_v11, 0.0  ;;  %v2243_v62 = vadd.f32 %v2242_v34, %v6217_v42 }
 0x1ea   :  { %v2561_v26 = vadd.f32 %v6064_v6, %v2248_v18 }
 0x1eb   :  { %v4788_v39 = vpack.c.bf16 %v2687_v25, %v2686_v15  ;;  %v2560_v3 = vadd.f32 %v6064_v6, %v2243_v62  ;;  %4207 = vmatmul.mubr.msk.f32.vlgmr.msra.gmra.mrb[80].mxu1 %vm292_vm0, %v5992_v47  ;;  %v4612_v22 = vpop.f32.mrb[84].mxu0  ;;  %v6788_v25 = vld [vmem:[#allocation6_spill] sm:$0xff]  ;;  %v6789_v62 = vld [vmem:[#allocation7_spill] sm:$0xff] }
 0x1ec   :  { %v2689_v0 = vmax.f32 %v2561_v26, 0.0  ;;  %v2258_v16 = vadd.f32 %v4612_v22, %v6232_v12  ;;  %v2252_v13 = vpop.f32.mrb[85].mxu0  ;;  %4240 = vmatprep.mubr.msk.f32.mxu1 %vm292_vm0, %v6547_v37 }
 0x1ed   :  { %v2688_v42 = vmax.f32 %v2560_v3, 0.0  ;;  %4790 = vmatprep.subr.msk.bf16.mxu1 %vm6222_vm1, %v4788_v39  ;;  %v2253_v56 = vadd.f32 %v2252_v13, %v6236_v17 }
 0x1ee   :  { %4793 = vmatpush3.bf16.xpose.msk.msra.mxu1 %vm6222_vm1, %v6463_v53  ;;  %v2563_v47 = vadd.f32 %v6064_v6, %v2258_v16  ;;  %v6790_v16 = vld [vmem:[#allocation8_spill] sm:$0xff] }
 0x1ef   :  { %v4794_v12 = vpack.c.bf16 %v2689_v0, %v2688_v42  ;;  %v2562_v20 = vadd.f32 %v6064_v6, %v2253_v56  ;;  %v4615_v4 = vpop.f32.mrb[86].mxu0 }
 0x1f0   :  { %v2691_v63 = vmax.f32 %v2563_v47, 0.0  ;;  %v2268_v5 = vadd.f32 %v4615_v4, %v6244_v33  ;;  %v2262_v29 = vpop.f32.mrb[87].mxu0  ;;  %v6791_v47 = vld [vmem:[#allocation9_spill] sm:$0xff] }
 0x1f1   :  { %v2690_v57 = vmax.f32 %v2562_v20, 0.0  ;;  %4796 = vmatprep.subr.msk.bf16.mxu1 %vm6222_vm1, %v4794_v12  ;;  %v2263_v17 = vadd.f32 %v2262_v29, %v6785_v46 }
 0x1f2   :  { %v2565_v32 = vadd.f32 %v6064_v6, %v2268_v5 }
 0x1f3   :  { %v4800_v31 = vpack.c.bf16 %v2691_v63, %v2690_v57  ;;  %v2564_v53 = vadd.f32 %v6064_v6, %v2263_v17  ;;  %v4618_v60 = vpop.f32.mrb[88].mxu0  ;;  %v6792_v57 = vld [vmem:[#allocation10_spill] sm:$0xff] }
 0x1f4   :  { %v2693_v36 = vmax.f32 %v2565_v32, 0.0  ;;  %v2278_v61 = vadd.f32 %v4618_v60, %v6786_v50  ;;  %v2272_v10 = vpop.f32.mrb[89].mxu0 }
 0x1f5   :  { %v2692_v45 = vmax.f32 %v2564_v53, 0.0  ;;  %v2273_v33 = vadd.f32 %v2272_v10, %v6787_v52  ;;  %v6794_v10 = vld [vmem:[#allocation12_spill] sm:$0xff] }
 0x1f6   :  { %4799 = vmatpush3.bf16.xpose.msk.msra.mxu1 %vm6222_vm1, %v6476_v1  ;;  %v2567_v54 = vadd.f32 %v6064_v6, %v2278_v61  ;;  %v6579_v1 = vld [vmem:[%s6753_s4] ss:$0 sm:$0xff] }
 0x1f7   :  { %v4806_v44 = vpack.c.bf16 %v2693_v36, %v2692_v45  ;;  %4802 = vmatprep.subr.msk.bf16.mxu1 %vm6222_vm1, %v4800_v31  ;;  %v2566_v59 = vadd.f32 %v6064_v6, %v2273_v33  ;;  %v4621_v11 = vpop.f32.mrb[90].mxu0  ;;  %v6793_v31 = vld [vmem:[#allocation11_spill] sm:$0xff] }
 0x1f8   :  { %v2695_v51 = vmax.f32 %v2567_v54, 0.0  ;;  %v2288_v18 = vadd.f32 %v4621_v11, %v6788_v25  ;;  %v2282_v34 = vpop.f32.mrb[91].mxu0  ;;  %v6795_v54 = vld [vmem:[#allocation13_spill] sm:$0xff] }
 0x1f9   :  { %v2694_v15 = vmax.f32 %v2566_v59, 0.0  ;;  %v2283_v26 = vadd.f32 %v2282_v34, %v6789_v62  ;;  %v6796_v34 = vld [vmem:[#allocation14_spill] sm:$0xff] }
 0x1fa   :  { %v2569_v39 = vadd.f32 %v6579_v1, %v2288_v18 }
 0x1fb   :  { %v4812_v3 = vpack.c.bf16 %v2695_v51, %v2694_v15  ;;  %v2568_v22 = vadd.f32 %v6579_v1, %v2283_v26  ;;  %v4624_v0 = vpop.f32.mrb[92].mxu0 }
 0x1fc   :  { %v2697_v6 = vmax.f32 %v2569_v39, 0.0  ;;  %v2298_v13 = vadd.f32 %v4624_v0, %v6790_v16  ;;  %v2292_v42 = vpop.f32.mrb[93].mxu0  ;;  %v6797_v39 = vld [vmem:[#allocation15_spill] sm:$0xff] }
 0x1fd   :  { %v2696_v56 = vmax.f32 %v2568_v22, 0.0  ;;  %v2293_v12 = vadd.f32 %v2292_v42, %v6791_v47 }
 0x1fe   :  { %4805 = vmatpush3.bf16.xpose.msk.msra.mxu1 %vm6222_vm1, %v6484_v41  ;;  %v2571_v20 = vadd.f32 %v6579_v1, %v2298_v13 }
 0x1ff   :  { %4808 = vmatprep.subr.msk.bf16.mxu1 %vm6222_vm1, %v4806_v44  ;;  %v4818_v4 = vpack.c.bf16 %v2697_v6, %v2696_v56  ;;  %v2570_v63 = vadd.f32 %v6579_v1, %v2293_v12  ;;  %v4627_v5 = vpop.f32.mrb[94].mxu0  ;;  %v6799_v12 = vld [vmem:[#allocation17_spill] sm:$0xff] }
 0x200   :  { %v2699_v29 = vmax.f32 %v2571_v20, 0.0  ;;  %v2308_v46 = vadd.f32 %v4627_v5, %v6792_v57  ;;  %v2302_v17 = vpop.f32.mrb[95].mxu0 }
 0x201   :  { %v2698_v32 = vmax.f32 %v2570_v63, 0.0  ;;  %v2303_v53 = vadd.f32 %v2302_v17, %v6793_v31  ;;  %v6800_v17 = vld [vmem:[#allocation18_spill] sm:$0xff] }
 0x202   :  { %v2573_v60 = vadd.f32 %v6579_v1, %v2308_v46 }
 0x203   :  { %v4824_v36 = vpack.c.bf16 %v2699_v29, %v2698_v32  ;;  %v2572_v41 = vadd.f32 %v6579_v1, %v2303_v53  ;;  %v4630_v50 = vpop.f32.mrb[96].mxu0 }
 0x204   :  { %v2701_v61 = vmax.f32 %v2573_v60, 0.0  ;;  %v2318_v45 = vadd.f32 %v4630_v50, %v6794_v10  ;;  %v2312_v52 = vpop.f32.mrb[97].mxu0  ;;  %v6801_v60 = vld [vmem:[#allocation19_spill] sm:$0xff] }
 0x205   :  { %v2700_v33 = vmax.f32 %v2572_v41, 0.0  ;;  %v2313_v44 = vadd.f32 %v2312_v52, %v6795_v54 }
 0x206   :  { %4811 = vmatpush3.bf16.xpose.msk.msra.mxu1 %vm6222_vm1, %v6497_v9  ;;  %v2575_v59 = vadd.f32 %v6579_v1, %v2318_v45  ;;  %v6802_v45 = vld [vmem:[#allocation20_spill] sm:$0xff] }
 0x207   :  { %4814 = vmatprep.subr.msk.bf16.mxu1 %vm6222_vm1, %v4812_v3  ;;  %v4830_v11 = vpack.c.bf16 %v2701_v61, %v2700_v33  ;;  %v2574_v51 = vadd.f32 %v6579_v1, %v2313_v44  ;;  %v4633_v25 = vpop.f32.mrb[98].mxu0  ;;  %v6798_v3 = vld [vmem:[#allocation16_spill] sm:$0xff]  ;;  %v6803_v44 = vld [vmem:[#allocation21_spill] sm:$0xff] }
 0x208   :  { %v2703_v18 = vmax.f32 %v2575_v59, 0.0  ;;  %v2328_v15 = vadd.f32 %v4633_v25, %v6796_v34  ;;  %v2322_v62 = vpop.f32.mrb[99].mxu0 }
 0x209   :  { %v2702_v26 = vmax.f32 %v2574_v51, 0.0  ;;  %v2323_v22 = vadd.f32 %v2322_v62, %v6797_v39  ;;  %v6804_v62 = vld [vmem:[#allocation22_spill] sm:$0xff] }
 0x20a   :  { %v2577_v0 = vadd.f32 %v6579_v1, %v2328_v15 }
 0x20b   :  { %v6608_v6 = vpack.c.bf16 %v2703_v18, %v2702_v26  ;;  %v2576_v9 = vadd.f32 %v6579_v1, %v2323_v22  ;;  %v4636_v16 = vpop.f32.mrb[100].mxu0 }
 0x20c   :  { %v2705_v13 = vmax.f32 %v2577_v0, 0.0  ;;  %v2338_v42 = vadd.f32 %v4636_v16, %v6798_v3  ;;  %v2332_v56 = vpop.f32.mrb[101].mxu0  ;;  %v6805_v0 = vld [vmem:[#allocation23_spill] sm:$0xff] }
 0x20d   :  { %v2704_v47 = vmax.f32 %v2576_v9, 0.0  ;;  %v2333_v20 = vadd.f32 %v2332_v56, %v6799_v12  ;;  %v6806_v56 = vld [vmem:[#allocation24_spill] sm:$0xff] }
 0x20e   :  { %4817 = vmatpush3.bf16.xpose.msk.msra.mxu1 %vm6222_vm1, %v6505_v28  ;;  %v2579_v63 = vadd.f32 %v6579_v1, %v2338_v42 }
 0x20f   :  { %4820 = vmatprep.subr.msk.bf16.mxu1 %vm6222_vm1, %v4818_v4  ;;  %v6619_v5 = vpack.c.bf16 %v2705_v13, %v2704_v47  ;;  %v2578_v29 = vadd.f32 %v6579_v1, %v2333_v20  ;;  %v4639_v57 = vpop.f32.mrb[102].mxu0 }
 0x210   :  { %v2707_v46 = vmax.f32 %v2579_v63, 0.0  ;;  %v2348_v32 = vadd.f32 %v4639_v57, %v6800_v17  ;;  %v2342_v31 = vpop.f32.mrb[103].mxu0 }
 0x211   :  { %v2706_v53 = vmax.f32 %v2578_v29, 0.0  ;;  %v2343_v41 = vadd.f32 %v2342_v31, %v6801_v60  ;;  %v6808_v31 = vld [vmem:[#allocation26_spill] sm:$0xff] }
 0x212   :  { %v2581_v50 = vadd.f32 %v6579_v1, %v2348_v32 }
 0x213   :  { %v6625_v28 = vpack.c.bf16 %v2707_v46, %v2706_v53  ;;  %v2580_v61 = vadd.f32 %v6579_v1, %v2343_v41  ;;  %v4642_v10 = vpop.f32.mrb[104].mxu0 }
 0x214   :  { %v2709_v4 = vmax.f32 %v2581_v50, 0.0  ;;  %v2358_v52 = vadd.f32 %v4642_v10, %v6802_v45  ;;  %v2352_v33 = vpop.f32.mrb[105].mxu0  ;;  %v6809_v50 = vld [vmem:[#allocation27_spill] sm:$0xff] }
 0x215   :  { %v2708_v54 = vmax.f32 %v2580_v61, 0.0  ;;  %v2353_v59 = vadd.f32 %v2352_v33, %v6803_v44  ;;  %v6810_v33 = vld [vmem:[#allocation28_spill] sm:$0xff] }
 0x216   :  { %4823 = vmatpush3.bf16.xpose.msk.msra.mxu1 %vm6222_vm1, %v6519_v14  ;;  %v2583_v51 = vadd.f32 %v6579_v1, %v2358_v52 }
 0x217   :  { %v6634_v25 = vpack.c.bf16 %v2709_v4, %v2708_v54  ;;  %v2582_v18 = vadd.f32 %v6579_v1, %v2353_v59  ;;  %v4645_v34 = vpop.f32.mrb[106].mxu0  ;;  %4826 = vmatprep.subr.msk.bf16.mxu1 %vm6222_vm1, %v4824_v36  ;;  %v6807_v36 = vld [vmem:[#allocation25_spill] sm:$0xff] }
 0x218   :  { %v2711_v15 = vmax.f32 %v2583_v51, 0.0  ;;  %v2368_v26 = vadd.f32 %v4645_v34, %v6804_v62  ;;  %v2362_v39 = vpop.f32.mrb[107].mxu0 }
 0x219   :  { %v2710_v22 = vmax.f32 %v2582_v18, 0.0  ;;  %v2363_v9 = vadd.f32 %v2362_v39, %v6805_v0 }
 0x21a   :  { %v2585_v16 = vadd.f32 %v6579_v1, %v2368_v26 }
 0x21b   :  { %v6642_v14 = vpack.c.bf16 %v2711_v15, %v2710_v22  ;;  %v2584_v13 = vadd.f32 %v6579_v1, %v2363_v9  ;;  %v4648_v3 = vpop.f32.mrb[108].mxu0 }
 0x21c   :  { %v2713_v42 = vmax.f32 %v2585_v16, 0.0  ;;  %v2378_v47 = vadd.f32 %v4648_v3, %v6806_v56  ;;  %v2372_v12 = vpop.f32.mrb[109].mxu0 }
 0x21d   :  { %v2712_v20 = vmax.f32 %v2584_v13, 0.0  ;;  %v2373_v63 = vadd.f32 %v2372_v12, %v6807_v36 }
 0x21e   :  { %4829 = vmatpush3.bf16.xpose.msk.msra.mxu1 %vm6222_vm1, %v6525_v40  ;;  %v2587_v29 = vadd.f32 %v6579_v1, %v2378_v47 }
 0x21f   :  { %v6651_v57 = vpack.c.bf16 %v2713_v42, %v2712_v20  ;;  %v2586_v46 = vadd.f32 %v6579_v1, %v2373_v63  ;;  %v4651_v17 = vpop.f32.mrb[110].mxu0  ;;  %4832 = vmatprep.subr.msk.bf16.mxu1 %vm6222_vm1, %v4830_v11  ;;  %v6811_v11 = vld [vmem:[#allocation29_spill] sm:$0xff] }
 0x220   :  { %v2715_v32 = vmax.f32 %v2587_v29, 0.0  ;;  %v2388_v53 = vadd.f32 %v4651_v17, %v6808_v31  ;;  %v2382_v60 = vpop.f32.mrb[111].mxu0 }
 0x221   :  { %v2714_v41 = vmax.f32 %v2586_v46, 0.0  ;;  %v2383_v61 = vadd.f32 %v2382_v60, %v6809_v50 }
 0x222   :  { %v2589_v10 = vadd.f32 %v6579_v1, %v2388_v53 }
 0x223   :  { %v6659_v40 = vpack.c.bf16 %v2715_v32, %v2714_v41  ;;  %v2588_v4 = vadd.f32 %v6579_v1, %v2383_v61  ;;  %v4654_v45 = vpop.f32.mrb[112].mxu0 }
 0x224   :  { %v2717_v52 = vmax.f32 %v2589_v10, 0.0  ;;  %v2398_v54 = vadd.f32 %v4654_v45, %v6810_v33  ;;  %v2392_v44 = vpop.f32.mrb[113].mxu0 }
 0x225   :  { %v2716_v59 = vmax.f32 %v2588_v4, 0.0  ;;  %v2393_v51 = vadd.f32 %v2392_v44, %v6811_v11 }
 0x226   :  { %v2591_v18 = vadd.f32 %v6579_v1, %v2398_v54  ;;  %4835 = vmatpush3.bf16.xpose.msk.msra.mxu1 %vm6222_vm1, %v6534_v30 }
 0x227   :  { %v6668_v34 = vpack.c.bf16 %v2717_v52, %v2716_v59  ;;  %v2590_v15 = vadd.f32 %v6579_v1, %v2393_v51  ;;  %v4657_v62 = vpop.f32.mrb[114].mxu0 }
 0x228   :  { %v2719_v26 = vmax.f32 %v2591_v18, 0.0  ;;  %v2408_v39 = vadd.f32 %v4657_v62, %v6385_v19  ;;  %v2402_v22 = vpop.f32.mrb[115].mxu0 }
 0x229   :  { %v2718_v0 = vmax.f32 %v2590_v15, 0.0  ;;  %v2403_v9 = vadd.f32 %v2402_v22, %v6392_v23 }
 0x22a   :  { %v2593_v16 = vadd.f32 %v6579_v1, %v2408_v39 }
 0x22b   :  { %v4836_v13 = vpack.c.bf16 %v2719_v26, %v2718_v0  ;;  %v2592_v3 = vadd.f32 %v6579_v1, %v2403_v9  ;;  %v4660_v42 = vpop.f32.mrb[116].mxu0 }
 0x22c   :  { %v2721_v56 = vmax.f32 %v2593_v16, 0.0  ;;  %v2418_v30 = vadd.f32 %v4660_v42, %v6408_v7  ;;  %v2412_v47 = vpop.f32.mrb[117].mxu0 }
 0x22d   :  { %v2720_v12 = vmax.f32 %v2592_v3, 0.0  ;;  %4838 = vmatprep.subr.msk.bf16.mxu1 %vm6222_vm1, %v4836_v13  ;;  %4241 = vmatmul.mubr.msk.f32.vlgmr.msra.gmra.mrb[82].mxu1 %vm292_vm0, %v6547_v37  ;;  %v2413_v19 = vadd.f32 %v2412_v47, %v6411_v43 }
 0x22e   :  { %4841 = vmatpush3.bf16.xpose.msk.msra.mxu1 %vm6222_vm1, %v6608_v6  ;;  %v2595_v23 = vadd.f32 %v6579_v1, %v2418_v30  ;;  %4274 = vmatprep.mubr.msk.f32.mxu1 %vm292_vm0, %v6547_v37 }
 0x22f   :  { %v4842_v7 = vpack.c.bf16 %v2721_v56, %v2720_v12  ;;  %v2594_v20 = vadd.f32 %v6579_v1, %v2413_v19  ;;  %v4663_v36 = vpop.f32.mrb[118].mxu0 }
 0x230   :  { %v2723_v63 = vmax.f32 %v2595_v23, 0.0  ;;  %v2428_v29 = vadd.f32 %v4663_v36, %v6425_v38  ;;  %v2422_v46 = vpop.f32.mrb[119].mxu0  ;;  %v5022_v23 = vmov 1966171168  }
 0x231   :  { %v2722_v17 = vmax.f32 %v2594_v20, 0.0  ;;  %4844 = vmatprep.subr.msk.bf16.mxu1 %vm6222_vm1, %v4842_v7  ;;  %v2423_v43 = vadd.f32 %v2422_v46, %v6428_v49  ;;  %v3437_v7 = vunpack.c.l.s4 %v5022_v23 }
 0x232   :  { %v2597_v6 = vadd.f32 %v6579_v1, %v2428_v29 }
 0x233   :  { %v4848_v32 = vpack.c.bf16 %v2723_v63, %v2722_v17  ;;  %v2596_v31 = vadd.f32 %v6579_v1, %v2423_v43  ;;  %v4666_v53 = vpop.f32.mrb[120].mxu0  ;;  %v3438_v20 = vunpack.c.0.s8 %v3437_v7 }
 0x234   :  { %v2725_v60 = vmax.f32 %v2597_v6, 0.0  ;;  %v2438_v41 = vadd.f32 %v4666_v53, %v6442_v58  ;;  %v2432_v50 = vpop.f32.mrb[121].mxu0 }
 0x235   :  { %v2724_v61 = vmax.f32 %v2596_v31, 0.0  ;;  %v2433_v38 = vadd.f32 %v2432_v50, %v6445_v35 }
 0x236   :  { %4847 = vmatpush3.bf16.xpose.msk.msra.mxu1 %vm6222_vm1, %v6619_v5  ;;  %v2599_v10 = vadd.f32 %v6579_v1, %v2438_v41 }
 0x237   :  { %v4854_v49 = vpack.c.bf16 %v2725_v60, %v2724_v61  ;;  %4850 = vmatprep.subr.msk.bf16.mxu1 %vm6222_vm1, %v4848_v32  ;;  %v2598_v4 = vadd.f32 %v6579_v1, %v2433_v38  ;;  %v4669_v45 = vpop.f32.mrb[122].mxu0 }
 0x238   :  { %v2727_v52 = vmax.f32 %v2599_v10, 0.0  ;;  %v2448_v58 = vadd.f32 %v4669_v45, %v6461_v48  ;;  %v2442_v33 = vpop.f32.mrb[123].mxu0 }
 0x239   :  { %v2726_v54 = vmax.f32 %v2598_v4, 0.0  ;;  %v2443_v35 = vadd.f32 %v2442_v33, %v6466_v24 }
 0x23a   :  { %v2601_v44 = vadd.f32 %v6579_v1, %v2448_v58 }
 0x23b   :  { %v4860_v59 = vpack.c.bf16 %v2727_v52, %v2726_v54  ;;  %v2600_v5 = vadd.f32 %v6579_v1, %v2443_v35  ;;  %v4672_v11 = vpop.f32.mrb[124].mxu0 }
 0x23c   :  { %v2729_v51 = vmax.f32 %v2601_v44, 0.0  ;;  %v2458_v18 = vadd.f32 %v4672_v11, %v6482_v2  ;;  %v2452_v15 = vpop.f32.mrb[125].mxu0 }
 0x23d   :  { %v2728_v62 = vmax.f32 %v2600_v5, 0.0  ;;  %v2453_v26 = vadd.f32 %v2452_v15, %v6487_v27 }
 0x23e   :  { %4853 = vmatpush3.bf16.xpose.msk.msra.mxu1 %vm6222_vm1, %v6625_v28  ;;  %v2603_v48 = vadd.f32 %v6579_v1, %v2458_v18 }
 0x23f   :  { %4856 = vmatprep.subr.msk.bf16.mxu1 %vm6222_vm1, %v4854_v49  ;;  %v4866_v24 = vpack.c.bf16 %v2729_v51, %v2728_v62  ;;  %v2602_v39 = vadd.f32 %v6579_v1, %v2453_v26  ;;  %v4675_v22 = vpop.f32.mrb[126].mxu0 }
 0x240   :  { %v2731_v0 = vmax.f32 %v2603_v48, 0.0  ;;  %v2468_v2 = vadd.f32 %v4675_v22, %v6503_v21  ;;  %v2462_v9 = vpop.f32.mrb[127].mxu0  ;;  %v3412_v21 = vlaneseq }
 0x241   :  { %v2730_v16 = vmax.f32 %v2602_v39, 0.0  ;;  %v2463_v27 = vadd.f32 %v2462_v9, %v6508_v8 }
 0x242   :  { %v2605_v13 = vadd.f32 %v6579_v1, %v2468_v2  ;;  %v3413_v8 = vshrl.u32 %v3412_v21, 7 }
 0x243   :  { %v4872_v3 = vpack.c.bf16 %v2731_v0, %v2730_v16  ;;  %v2604_v28 = vadd.f32 %v6579_v1, %v2463_v27 }
 0x244   :  { %v2733_v42 = vmax.f32 %v2605_v13, 0.0  ;;  %v3414_v1 = vsub.s32 0, %v3413_v8 }
 0x245   :  { %v2732_v56 = vmax.f32 %v2604_v28, 0.0 }
 0x246   :  { %4859 = vmatpush3.bf16.xpose.msk.msra.mxu1 %vm6222_vm1, %v6634_v25  ;;  %v3410_v25 = vpop.permute.xlu0 %3409 }
 0x247   :  { %4862 = vmatprep.subr.msk.bf16.mxu1 %vm6222_vm1, %v4860_v59  ;;  %v4878_v30 = vpack.c.bf16 %v2733_v42, %v2732_v56 }
 0x24e   :  { %4865 = vmatpush3.bf16.xpose.msk.msra.mxu1 %vm6222_vm1, %v6642_v14  ;;  %v3415_v14 = vrot.slane %v3410_v25, %v3414_v1 }
 0x24f   :  { %4868 = vmatprep.subr.msk.bf16.mxu1 %vm6222_vm1, %v4866_v24 }
 0x256   :  { %4871 = vmatpush3.bf16.xpose.msk.msra.mxu1 %vm6222_vm1, %v6651_v57 }
 0x257   :  { %4874 = vmatprep.subr.msk.bf16.mxu1 %vm6222_vm1, %v4872_v3 }
 0x25e   :  { %4877 = vmatpush3.bf16.xpose.msk.msra.mxu1 %vm6222_vm1, %v6659_v40 }
 0x25f   :  { %4880 = vmatprep.subr.msk.bf16.mxu1 %vm6222_vm1, %v4878_v30 }
 0x266   :  { %4883 = vmatpush3.bf16.xpose.msk.msra.mxu1 %vm6222_vm1, %v6668_v34  ;;  %v3441_v34 = vsub.s32 %v3438_v20, %v3413_v8 }
 0x26d   :  { %4275 = vmatmul.mubr.msk.f32.vlgmr.msra.gmra.mrb[84].mxu1 %vm292_vm0, %v6547_v37 }
 0x27e   :  { %v3188_v57 = vpop.f32.mrb[78].mxu1 }
 0x27f   :  { %v3190_v47 = vpop.f32.mrb[79].mxu1  ;;  %v3416_v12 = vadd.f32 %v3415_v14, %v3188_v57 }
 0x280   :  { %v3417_v19 = vadd.f32 %v3415_v14, %v3190_v47 }
 0x282   :  { %v3432_v40 = vcombine.low %v3416_v12, %v3417_v19 }
 0x284   :  { %v3442_v37 = vrot.slane %v3432_v40, %v3441_v34 }
 0x2be   :  { %v3259_v36 = vpop.f32.mrb[80].mxu1 }
 0x2bf   :  { %v3418_v63 = vadd.f32 %v3415_v14, %v3259_v36  ;;  %v3261_v55 = vpop.f32.mrb[81].mxu1 }
 0x2c0   :  { %v3419_v29 = vadd.f32 %v3415_v14, %v3261_v55 }
 0x2c2   :  { %v3433_v46 = vcombine.low %v3418_v63, %v3419_v29 }
 0x2c4   :  { %v3449_v17 = vrot.slane %v3433_v46, %v3441_v34 }
 0x2c6   :  { %v3464_v43 = vcombine.low %v3442_v37, %v3449_v17 }
 0x2c8   :  { %v3472_v52 = vrot.slane %v3464_v43, %v3441_v34 }
 0x300   :  { %v3330_v6 = vpop.f32.mrb[82].mxu1 }
 0x301   :  { %v3420_v32 = vadd.f32 %v3415_v14, %v3330_v6  ;;  %v3332_v31 = vpop.f32.mrb[83].mxu1 }
 0x302   :  { %v3421_v53 = vadd.f32 %v3415_v14, %v3332_v31 }
 0x304   :  { %v3434_v60 = vcombine.low %v3420_v32, %v3421_v53 }
 0x306   :  { %v3456_v49 = vrot.slane %v3434_v60, %v3441_v34 }
 0x340   :  { %v3401_v41 = vpop.f32.mrb[84].mxu1 }
 0x341   :  { %v3422_v50 = vadd.f32 %v3415_v14, %v3401_v41  ;;  %v3403_v61 = vpop.f32.mrb[85].mxu1 }
 0x342   :  { %v3423_v38 = vadd.f32 %v3415_v14, %v3403_v61 }
 0x344   :  { %v3435_v10 = vcombine.low %v3422_v50, %v3423_v38 }
 0x346   :  { %v3463_v4 = vrot.slane %v3435_v10, %v3441_v34 }
 0x348   :  { %v3465_v45 = vcombine.low %v3456_v49, %v3463_v4 }
 0x34a   :  { %v3479_v58 = vrot.slane %v3465_v45, %v3441_v34 }
 0x34c   :  { %v3480_v33 = vcombine.low %v3472_v52, %v3479_v58 }
 0x34e   :  { %3482 = vst [vmem:[%s6755_s7] sm:$0xff] %v3480_v33 }

</bundles_post_ra>
